<compile_context>
chip_gen: v5e
topology: v5e:2x2
jax: 0.10.0
libtpu: 0.0.40
codegen_flags: <defaults>
</compile_context>

<pallas_src>
import jax
import jax.numpy as jnp
from jax.experimental import pallas as pl
from jax.experimental.pallas import tpu as pltpu


# ----------------------------------------------------------------------------
# Fused Pallas kernel: all LSTM layers (wavefront-interleaved) + FC epilogue.
# ----------------------------------------------------------------------------
def _make_fused_kernel(num_layers, T, Bp, H):
    """Build the fused kernel for static (num_layers, T, Bp, H).

    Ref layout (positional):
      refs[0]                     : x        (T*Bp, Din0)  bf16, time-major, batch-padded
      refs[1+3l], [2+3l], [3+3l]  : W_ih^T (Din_l,4H) bf16, W_hh^T (H,4H) bf16,
                                    bias (1,4H) f32  (PyTorch gate order [i,f,g,o])
      refs[1+3L], refs[2+3L]      : fc_w (H,1) f32, fc_b (1,1) f32
      refs[3+3L]                  : out (Bp, 1) f32
    """
    L = num_layers

    def kernel(*refs):
        x_ref = refs[0]
        fc_w_ref = refs[1 + 3 * L]
        fc_b_ref = refs[2 + 3 * L]
        out_ref = refs[3 + 3 * L]

        # Hoisted, once-per-kernel weight/bias reads (never inside the recurrence).
        wih = [refs[1 + 3 * l][...] for l in range(L)]      # bf16
        whh = [refs[2 + 3 * l][...] for l in range(L)]      # bf16
        bias = [refs[3 + 3 * l][...] for l in range(L)]     # f32

        # Layer-0 input projection for the whole sequence: one big MXU matmul
        # (M = T*Bp rows), entirely off the serial recurrence path.
        gx0 = jnp.dot(x_ref[...], wih[0],
                      preferred_element_type=jnp.float32) + bias[0]   # (T*Bp, 4H) f32

        h = [jnp.zeros((Bp, H), jnp.float32) for _ in range(L)]
        c = [jnp.zeros((Bp, H), jnp.float32) for _ in range(L)]

        def lstm_step(gates, c_prev):
            # gates: (Bp, 4H) f32 pre-activations; 4H == 128 lanes == one vreg.
            # Activate the FULL slab twice (EUP slot has slack) and slice the
            # gate columns from the full-vreg results.
            sig = jax.nn.sigmoid(gates)
            tnh = jnp.tanh(gates)
            i_g = sig[:, 0 * H:1 * H]
            f_g = sig[:, 1 * H:2 * H]
            g_g = tnh[:, 2 * H:3 * H]
            o_g = sig[:, 3 * H:4 * H]
            c_new = f_g * c_prev + i_g * g_g
            h_new = o_g * jnp.tanh(c_new)
            return h_new, c_new

        # Wavefront schedule: wave w executes step (l, t = w - l) for every
        # layer that is ready.  Layers are visited high -> low inside a wave so
        # that h[l-1] still holds h_{l-1, t} (produced in the previous wave).
        # The whole schedule is a static unroll; the LLO scheduler interleaves
        # the independent per-layer matmul/gate chains.
        for wave in range(T + L - 1):
            for l in range(L - 1, -1, -1):
                t = wave - l
                if not (0 <= t < T):
                    continue
                if l == 0:
                    pre = gx0[t * Bp:(t + 1) * Bp, :]                     # (Bp, 4H) f32
                else:
                    pre = bias[l] + jnp.dot(
                        h[l - 1].astype(jnp.bfloat16), wih[l],
                        preferred_element_type=jnp.float32)               # (Bp, 4H) f32
                gates = pre + jnp.dot(
                    h[l].astype(jnp.bfloat16), whh[l],
                    preferred_element_type=jnp.float32)                   # (Bp, 4H) f32
                h[l], c[l] = lstm_step(gates, c[l])

        # Fused FC epilogue (single tiny matmul, kept in f32): only (Bp, 1)
        # ever leaves the kernel.
        out_ref[...] = (
            jnp.dot(h[L - 1], fc_w_ref[...], preferred_element_type=jnp.float32)
            + fc_b_ref[...]
        )

    return kernel


# ----------------------------------------------------------------------------
# Wrapper
# ----------------------------------------------------------------------------
@jax.jit
def lstm1_forward(x, params):
    """Pallas implementation of LSTM1.forward.  x: (B, T, input_size) -> (B, 1)."""
    B, T, _ = x.shape
    H = params["fc_w"].shape[1]
    L = len(params["layers"])
    assert L >= 1, "LSTM1 requires at least one stacked layer"
    Bp = max(8, ((B + 7) // 8) * 8)                          # pad batch to sublane width

    # time-major, batch-padded, flattened to 2-D rows (t*Bp + b); bf16 MXU operand.
    xt = jnp.transpose(x, (1, 0, 2)).astype(jnp.float32)     # (T, B, Din)
    xt = jnp.pad(xt, ((0, 0), (0, Bp - B), (0, 0)))           # (T, Bp, Din)
    x2d = xt.reshape(T * Bp, -1).astype(jnp.bfloat16)         # (T*Bp, Din)

    kernel_inputs = [x2d]
    for layer in params["layers"]:
        kernel_inputs += [
            layer["w_ih"].T.astype(jnp.bfloat16),                          # (Din_l, 4H)
            layer["w_hh"].T.astype(jnp.bfloat16),                          # (H, 4H)
            (layer["b_ih"] + layer["b_hh"])[None, :].astype(jnp.float32),  # (1, 4H)
        ]
    kernel_inputs += [
        params["fc_w"].T.astype(jnp.float32),                 # (H, 1)
        params["fc_b"][None, :].astype(jnp.float32),          # (1, 1)
    ]

    vmem = pl.BlockSpec(memory_space=pltpu.MemorySpace.VMEM)
    out_padded = pl.pallas_call(
        _make_fused_kernel(L, T, Bp, H),
        out_shape=jax.ShapeDtypeStruct((Bp, 1), jnp.float32),
        in_specs=[vmem] * len(kernel_inputs),
        out_specs=vmem,
        compiler_params=pltpu.CompilerParams(vmem_limit_bytes=32 * 1024 * 1024),
    )(*kernel_inputs)
    return out_padded[:B]                                     # (B, 1)


# ----------------------------------------------------------------------------
# Deterministic parameter init (PyTorch-style uniform(-1/sqrt(H), 1/sqrt(H)))
# Weights kept in the native PyTorch layout / gate order [i, f, g, o].
# ----------------------------------------------------------------------------
def init_params(key, input_size, hidden_size, num_layers):
    k = 1.0 / float(hidden_size) ** 0.5
    layers = []
    for layer_idx in range(num_layers):
        d_in = input_size if layer_idx == 0 else hidden_size
        key, k1, k2, k3, k4 = jax.random.split(key, 5)
        layers.append({
            "w_ih": jax.random.uniform(k1, (4 * hidden_size, d_in), jnp.float32, -k, k),
            "w_hh": jax.random.uniform(k2, (4 * hidden_size, hidden_size), jnp.float32, -k, k),
            "b_ih": jax.random.uniform(k3, (4 * hidden_size,), jnp.float32, -k, k),
            "b_hh": jax.random.uniform(k4, (4 * hidden_size,), jnp.float32, -k, k),
        })
    key, k5, k6 = jax.random.split(key, 3)
    return {
        "layers": layers,
        "fc_w": jax.random.uniform(k5, (1, hidden_size), jnp.float32, -k, k),
        "fc_b": jax.random.uniform(k6, (1,), jnp.float32, -k, k),
    }


# ----------------------------------------------------------------------------
# Pure-JAX f32 reference (PyTorch gate order) for correctness checking.
# The kernel uses bf16 MXU operands, so the tolerance is loosened accordingly.
# ----------------------------------------------------------------------------
def reference_forward(x, params):
    B, T, _ = x.shape
    H = params["fc_w"].shape[1]
    seq = jnp.transpose(x, (1, 0, 2)).astype(jnp.float32)     # (T, B, Din)
    for layer in params["layers"]:
        wih_t = layer["w_ih"].T
        whh_t = layer["w_hh"].T
        b = (layer["b_ih"] + layer["b_hh"])[None, :]
        h = jnp.zeros((B, H), jnp.float32)
        c = jnp.zeros((B, H), jnp.float32)
        outs = []
        for t in range(T):
            gates = seq[t] @ wih_t + h @ whh_t + b
            i = jax.nn.sigmoid(gates[:, 0 * H:1 * H])
            f = jax.nn.sigmoid(gates[:, 1 * H:2 * H])
            g = jnp.tanh(gates[:, 2 * H:3 * H])
            o = jax.nn.sigmoid(gates[:, 3 * H:4 * H])
            c = f * c + i * g
            h = o * jnp.tanh(c)
            outs.append(h)
        seq = jnp.stack(outs, axis=0)
    return seq[-1] @ params["fc_w"].T + params["fc_b"][None, :]


# ----------------------------------------------------------------------------
if __name__ == "__main__":
    B, T = 2, 8
    input_size, hidden_size, num_layers = 4, 32, 2

    key = jax.random.PRNGKey(0)
    key, xkey = jax.random.split(key)
    x = jax.random.normal(xkey, (B, T, input_size), jnp.float32)

    params = init_params(key, input_size, hidden_size, num_layers)

    out = lstm1_forward(x, params)
    out = jax.block_until_ready(out)
    assert out.shape == (B, 1), out.shape

    ref = reference_forward(x, params)
    # bf16 MXU operands -> loosened tolerance vs. the full-f32 reference.
    assert jnp.allclose(out, ref, atol=5e-2, rtol=5e-2), (out, ref)

    print("KERNEL_OK")
</pallas_src>

<mosaic_0001>
module attributes {stable_mosaic.version = 11 : i64} {
  func.func @kernel(%arg0: memref<64x4xbf16, #tpu.memory_space<vmem>>, %arg1: memref<4x128xbf16, #tpu.memory_space<vmem>>, %arg2: memref<32x128xbf16, #tpu.memory_space<vmem>>, %arg3: memref<1x128xf32, #tpu.memory_space<vmem>>, %arg4: memref<32x128xbf16, #tpu.memory_space<vmem>>, %arg5: memref<32x128xbf16, #tpu.memory_space<vmem>>, %arg6: memref<1x128xf32, #tpu.memory_space<vmem>>, %arg7: memref<32x1xf32, #tpu.memory_space<vmem>>, %arg8: memref<1x1xf32, #tpu.memory_space<vmem>>, %arg9: memref<8x1xf32, #tpu.memory_space<vmem>>) attributes {dimension_semantics = [], scalar_prefetch = 0 : i64, scratch_operands = 0 : i64, tpu.core_type = #tpu.core_type<tc>} {
    %c0 = arith.constant 0 : index
    %c0_0 = arith.constant 0 : index
    %0 = vector.load %arg1[%c0, %c0_0] : memref<4x128xbf16, #tpu.memory_space<vmem>>, vector<4x128xbf16>
    %c0_1 = arith.constant 0 : index
    %c0_2 = arith.constant 0 : index
    %1 = vector.load %arg4[%c0_1, %c0_2] : memref<32x128xbf16, #tpu.memory_space<vmem>>, vector<32x128xbf16>
    %c0_3 = arith.constant 0 : index
    %c0_4 = arith.constant 0 : index
    %2 = vector.load %arg2[%c0_3, %c0_4] : memref<32x128xbf16, #tpu.memory_space<vmem>>, vector<32x128xbf16>
    %c0_5 = arith.constant 0 : index
    %c0_6 = arith.constant 0 : index
    %3 = vector.load %arg5[%c0_5, %c0_6] : memref<32x128xbf16, #tpu.memory_space<vmem>>, vector<32x128xbf16>
    %c0_7 = arith.constant 0 : index
    %c0_8 = arith.constant 0 : index
    %4 = vector.load %arg3[%c0_7, %c0_8] : memref<1x128xf32, #tpu.memory_space<vmem>>, vector<1x128xf32>
    %c0_9 = arith.constant 0 : index
    %c0_10 = arith.constant 0 : index
    %5 = vector.load %arg6[%c0_9, %c0_10] : memref<1x128xf32, #tpu.memory_space<vmem>>, vector<1x128xf32>
    %c0_11 = arith.constant 0 : index
    %c0_12 = arith.constant 0 : index
    %6 = vector.load %arg0[%c0_11, %c0_12] : memref<64x4xbf16, #tpu.memory_space<vmem>>, vector<64x4xbf16>
    %cst = arith.constant dense<0.000000e+00> : vector<64x128xf32>
    %7 = tpu.matmul %6, %0, %cst {dimension_numbers = #tpu.dot_dimension_numbers<[1], [0], [0], [1], [0, 0, 1, 1], [], []>} : vector<64x4xbf16>, vector<4x128xbf16>, vector<64x128xf32> -> vector<64x128xf32>
    %8 = vector.broadcast %4 : vector<1x128xf32> to vector<64x128xf32>
    %9 = arith.addf %7, %8 : vector<64x128xf32>
    %cst_13 = arith.constant 0.000000e+00 : f32
    %10 = vector.broadcast %cst_13 : f32 to vector<8x32xf32>
    %cst_14 = arith.constant 0.000000e+00 : f32
    %11 = vector.broadcast %cst_14 : f32 to vector<8x32xf32>
    %cst_15 = arith.constant 0.000000e+00 : f32
    %12 = vector.broadcast %cst_15 : f32 to vector<8x32xf32>
    %cst_16 = arith.constant 0.000000e+00 : f32
    %13 = vector.broadcast %cst_16 : f32 to vector<8x32xf32>
    %14 = vector.extract_strided_slice %9 {offsets = [0, 0], sizes = [8, 128], strides = [1, 1]} : vector<64x128xf32> to vector<8x128xf32>
    %15 = arith.truncf %10 : vector<8x32xf32> to vector<8x32xbf16>
    %cst_17 = arith.constant dense<0.000000e+00> : vector<8x128xf32>
    %16 = tpu.matmul %15, %2, %cst_17 {dimension_numbers = #tpu.dot_dimension_numbers<[1], [0], [0], [1], [0, 0, 1, 1], [], []>} : vector<8x32xbf16>, vector<32x128xbf16>, vector<8x128xf32> -> vector<8x128xf32>
    %17 = arith.addf %14, %16 : vector<8x128xf32>
    %18 = arith.negf %17 : vector<8x128xf32>
    %19 = math.exp %18 : vector<8x128xf32>
    %cst_18 = arith.constant 1.000000e+00 : f32
    %20 = vector.broadcast %cst_18 : f32 to vector<8x128xf32>
    %21 = arith.addf %20, %19 : vector<8x128xf32>
    %22 = arith.divf %20, %21 : vector<8x128xf32>
    %23 = math.tanh %17 : vector<8x128xf32>
    %24 = vector.extract_strided_slice %22 {offsets = [0, 0], sizes = [8, 32], strides = [1, 1]} : vector<8x128xf32> to vector<8x32xf32>
    %25 = vector.extract_strided_slice %22 {offsets = [0, 32], sizes = [8, 32], strides = [1, 1]} : vector<8x128xf32> to vector<8x32xf32>
    %26 = vector.extract_strided_slice %23 {offsets = [0, 64], sizes = [8, 32], strides = [1, 1]} : vector<8x128xf32> to vector<8x32xf32>
    %27 = vector.extract_strided_slice %22 {offsets = [0, 96], sizes = [8, 32], strides = [1, 1]} : vector<8x128xf32> to vector<8x32xf32>
    %28 = arith.mulf %25, %12 : vector<8x32xf32>
    %29 = arith.mulf %24, %26 : vector<8x32xf32>
    %30 = arith.addf %28, %29 : vector<8x32xf32>
    %31 = math.tanh %30 : vector<8x32xf32>
    %32 = arith.mulf %27, %31 : vector<8x32xf32>
    %33 = arith.truncf %32 : vector<8x32xf32> to vector<8x32xbf16>
    %cst_19 = arith.constant dense<0.000000e+00> : vector<8x128xf32>
    %34 = tpu.matmul %33, %1, %cst_19 {dimension_numbers = #tpu.dot_dimension_numbers<[1], [0], [0], [1], [0, 0, 1, 1], [], []>} : vector<8x32xbf16>, vector<32x128xbf16>, vector<8x128xf32> -> vector<8x128xf32>
    %35 = vector.broadcast %5 : vector<1x128xf32> to vector<8x128xf32>
    %36 = arith.addf %35, %34 : vector<8x128xf32>
    %37 = arith.truncf %11 : vector<8x32xf32> to vector<8x32xbf16>
    %cst_20 = arith.constant dense<0.000000e+00> : vector<8x128xf32>
    %38 = tpu.matmul %37, %3, %cst_20 {dimension_numbers = #tpu.dot_dimension_numbers<[1], [0], [0], [1], [0, 0, 1, 1], [], []>} : vector<8x32xbf16>, vector<32x128xbf16>, vector<8x128xf32> -> vector<8x128xf32>
    %39 = arith.addf %36, %38 : vector<8x128xf32>
    %40 = arith.negf %39 : vector<8x128xf32>
    %41 = math.exp %40 : vector<8x128xf32>
    %cst_21 = arith.constant 1.000000e+00 : f32
    %42 = vector.broadcast %cst_21 : f32 to vector<8x128xf32>
    %43 = arith.addf %42, %41 : vector<8x128xf32>
    %44 = arith.divf %42, %43 : vector<8x128xf32>
    %45 = math.tanh %39 : vector<8x128xf32>
    %46 = vector.extract_strided_slice %44 {offsets = [0, 0], sizes = [8, 32], strides = [1, 1]} : vector<8x128xf32> to vector<8x32xf32>
    %47 = vector.extract_strided_slice %44 {offsets = [0, 32], sizes = [8, 32], strides = [1, 1]} : vector<8x128xf32> to vector<8x32xf32>
    %48 = vector.extract_strided_slice %45 {offsets = [0, 64], sizes = [8, 32], strides = [1, 1]} : vector<8x128xf32> to vector<8x32xf32>
    %49 = vector.extract_strided_slice %44 {offsets = [0, 96], sizes = [8, 32], strides = [1, 1]} : vector<8x128xf32> to vector<8x32xf32>
    %50 = arith.mulf %47, %13 : vector<8x32xf32>
    %51 = arith.mulf %46, %48 : vector<8x32xf32>
    %52 = arith.addf %50, %51 : vector<8x32xf32>
    %53 = math.tanh %52 : vector<8x32xf32>
    %54 = arith.mulf %49, %53 : vector<8x32xf32>
    %55 = vector.extract_strided_slice %9 {offsets = [8, 0], sizes = [8, 128], strides = [1, 1]} : vector<64x128xf32> to vector<8x128xf32>
    %56 = arith.truncf %32 : vector<8x32xf32> to vector<8x32xbf16>
    %cst_22 = arith.constant dense<0.000000e+00> : vector<8x128xf32>
    %57 = tpu.matmul %56, %2, %cst_22 {dimension_numbers = #tpu.dot_dimension_numbers<[1], [0], [0], [1], [0, 0, 1, 1], [], []>} : vector<8x32xbf16>, vector<32x128xbf16>, vector<8x128xf32> -> vector<8x128xf32>
    %58 = arith.addf %55, %57 : vector<8x128xf32>
    %59 = arith.negf %58 : vector<8x128xf32>
    %60 = math.exp %59 : vector<8x128xf32>
    %cst_23 = arith.constant 1.000000e+00 : f32
    %61 = vector.broadcast %cst_23 : f32 to vector<8x128xf32>
    %62 = arith.addf %61, %60 : vector<8x128xf32>
    %63 = arith.divf %61, %62 : vector<8x128xf32>
    %64 = math.tanh %58 : vector<8x128xf32>
    %65 = vector.extract_strided_slice %63 {offsets = [0, 0], sizes = [8, 32], strides = [1, 1]} : vector<8x128xf32> to vector<8x32xf32>
    %66 = vector.extract_strided_slice %63 {offsets = [0, 32], sizes = [8, 32], strides = [1, 1]} : vector<8x128xf32> to vector<8x32xf32>
    %67 = vector.extract_strided_slice %64 {offsets = [0, 64], sizes = [8, 32], strides = [1, 1]} : vector<8x128xf32> to vector<8x32xf32>
    %68 = vector.extract_strided_slice %63 {offsets = [0, 96], sizes = [8, 32], strides = [1, 1]} : vector<8x128xf32> to vector<8x32xf32>
    %69 = arith.mulf %66, %30 : vector<8x32xf32>
    %70 = arith.mulf %65, %67 : vector<8x32xf32>
    %71 = arith.addf %69, %70 : vector<8x32xf32>
    %72 = math.tanh %71 : vector<8x32xf32>
    %73 = arith.mulf %68, %72 : vector<8x32xf32>
    %74 = arith.truncf %73 : vector<8x32xf32> to vector<8x32xbf16>
    %cst_24 = arith.constant dense<0.000000e+00> : vector<8x128xf32>
    %75 = tpu.matmul %74, %1, %cst_24 {dimension_numbers = #tpu.dot_dimension_numbers<[1], [0], [0], [1], [0, 0, 1, 1], [], []>} : vector<8x32xbf16>, vector<32x128xbf16>, vector<8x128xf32> -> vector<8x128xf32>
    %76 = vector.broadcast %5 : vector<1x128xf32> to vector<8x128xf32>
    %77 = arith.addf %76, %75 : vector<8x128xf32>
    %78 = arith.truncf %54 : vector<8x32xf32> to vector<8x32xbf16>
    %cst_25 = arith.constant dense<0.000000e+00> : vector<8x128xf32>
    %79 = tpu.matmul %78, %3, %cst_25 {dimension_numbers = #tpu.dot_dimension_numbers<[1], [0], [0], [1], [0, 0, 1, 1], [], []>} : vector<8x32xbf16>, vector<32x128xbf16>, vector<8x128xf32> -> vector<8x128xf32>
    %80 = arith.addf %77, %79 : vector<8x128xf32>
    %81 = arith.negf %80 : vector<8x128xf32>
    %82 = math.exp %81 : vector<8x128xf32>
    %cst_26 = arith.constant 1.000000e+00 : f32
    %83 = vector.broadcast %cst_26 : f32 to vector<8x128xf32>
    %84 = arith.addf %83, %82 : vector<8x128xf32>
    %85 = arith.divf %83, %84 : vector<8x128xf32>
    %86 = math.tanh %80 : vector<8x128xf32>
    %87 = vector.extract_strided_slice %85 {offsets = [0, 0], sizes = [8, 32], strides = [1, 1]} : vector<8x128xf32> to vector<8x32xf32>
    %88 = vector.extract_strided_slice %85 {offsets = [0, 32], sizes = [8, 32], strides = [1, 1]} : vector<8x128xf32> to vector<8x32xf32>
    %89 = vector.extract_strided_slice %86 {offsets = [0, 64], sizes = [8, 32], strides = [1, 1]} : vector<8x128xf32> to vector<8x32xf32>
    %90 = vector.extract_strided_slice %85 {offsets = [0, 96], sizes = [8, 32], strides = [1, 1]} : vector<8x128xf32> to vector<8x32xf32>
    %91 = arith.mulf %88, %52 : vector<8x32xf32>
    %92 = arith.mulf %87, %89 : vector<8x32xf32>
    %93 = arith.addf %91, %92 : vector<8x32xf32>
    %94 = math.tanh %93 : vector<8x32xf32>
    %95 = arith.mulf %90, %94 : vector<8x32xf32>
    %96 = vector.extract_strided_slice %9 {offsets = [16, 0], sizes = [8, 128], strides = [1, 1]} : vector<64x128xf32> to vector<8x128xf32>
    %97 = arith.truncf %73 : vector<8x32xf32> to vector<8x32xbf16>
    %cst_27 = arith.constant dense<0.000000e+00> : vector<8x128xf32>
    %98 = tpu.matmul %97, %2, %cst_27 {dimension_numbers = #tpu.dot_dimension_numbers<[1], [0], [0], [1], [0, 0, 1, 1], [], []>} : vector<8x32xbf16>, vector<32x128xbf16>, vector<8x128xf32> -> vector<8x128xf32>
    %99 = arith.addf %96, %98 : vector<8x128xf32>
    %100 = arith.negf %99 : vector<8x128xf32>
    %101 = math.exp %100 : vector<8x128xf32>
    %cst_28 = arith.constant 1.000000e+00 : f32
    %102 = vector.broadcast %cst_28 : f32 to vector<8x128xf32>
    %103 = arith.addf %102, %101 : vector<8x128xf32>
    %104 = arith.divf %102, %103 : vector<8x128xf32>
    %105 = math.tanh %99 : vector<8x128xf32>
    %106 = vector.extract_strided_slice %104 {offsets = [0, 0], sizes = [8, 32], strides = [1, 1]} : vector<8x128xf32> to vector<8x32xf32>
    %107 = vector.extract_strided_slice %104 {offsets = [0, 32], sizes = [8, 32], strides = [1, 1]} : vector<8x128xf32> to vector<8x32xf32>
    %108 = vector.extract_strided_slice %105 {offsets = [0, 64], sizes = [8, 32], strides = [1, 1]} : vector<8x128xf32> to vector<8x32xf32>
    %109 = vector.extract_strided_slice %104 {offsets = [0, 96], sizes = [8, 32], strides = [1, 1]} : vector<8x128xf32> to vector<8x32xf32>
    %110 = arith.mulf %107, %71 : vector<8x32xf32>
    %111 = arith.mulf %106, %108 : vector<8x32xf32>
    %112 = arith.addf %110, %111 : vector<8x32xf32>
    %113 = math.tanh %112 : vector<8x32xf32>
    %114 = arith.mulf %109, %113 : vector<8x32xf32>
    %115 = arith.truncf %114 : vector<8x32xf32> to vector<8x32xbf16>
    %cst_29 = arith.constant dense<0.000000e+00> : vector<8x128xf32>
    %116 = tpu.matmul %115, %1, %cst_29 {dimension_numbers = #tpu.dot_dimension_numbers<[1], [0], [0], [1], [0, 0, 1, 1], [], []>} : vector<8x32xbf16>, vector<32x128xbf16>, vector<8x128xf32> -> vector<8x128xf32>
    %117 = vector.broadcast %5 : vector<1x128xf32> to vector<8x128xf32>
    %118 = arith.addf %117, %116 : vector<8x128xf32>
    %119 = arith.truncf %95 : vector<8x32xf32> to vector<8x32xbf16>
    %cst_30 = arith.constant dense<0.000000e+00> : vector<8x128xf32>
    %120 = tpu.matmul %119, %3, %cst_30 {dimension_numbers = #tpu.dot_dimension_numbers<[1], [0], [0], [1], [0, 0, 1, 1], [], []>} : vector<8x32xbf16>, vector<32x128xbf16>, vector<8x128xf32> -> vector<8x128xf32>
    %121 = arith.addf %118, %120 : vector<8x128xf32>
    %122 = arith.negf %121 : vector<8x128xf32>
    %123 = math.exp %122 : vector<8x128xf32>
    %cst_31 = arith.constant 1.000000e+00 : f32
    %124 = vector.broadcast %cst_31 : f32 to vector<8x128xf32>
    %125 = arith.addf %124, %123 : vector<8x128xf32>
    %126 = arith.divf %124, %125 : vector<8x128xf32>
    %127 = math.tanh %121 : vector<8x128xf32>
    %128 = vector.extract_strided_slice %126 {offsets = [0, 0], sizes = [8, 32], strides = [1, 1]} : vector<8x128xf32> to vector<8x32xf32>
    %129 = vector.extract_strided_slice %126 {offsets = [0, 32], sizes = [8, 32], strides = [1, 1]} : vector<8x128xf32> to vector<8x32xf32>
    %130 = vector.extract_strided_slice %127 {offsets = [0, 64], sizes = [8, 32], strides = [1, 1]} : vector<8x128xf32> to vector<8x32xf32>
    %131 = vector.extract_strided_slice %126 {offsets = [0, 96], sizes = [8, 32], strides = [1, 1]} : vector<8x128xf32> to vector<8x32xf32>
    %132 = arith.mulf %129, %93 : vector<8x32xf32>
    %133 = arith.mulf %128, %130 : vector<8x32xf32>
    %134 = arith.addf %132, %133 : vector<8x32xf32>
    %135 = math.tanh %134 : vector<8x32xf32>
    %136 = arith.mulf %131, %135 : vector<8x32xf32>
    %137 = vector.extract_strided_slice %9 {offsets = [24, 0], sizes = [8, 128], strides = [1, 1]} : vector<64x128xf32> to vector<8x128xf32>
    %138 = arith.truncf %114 : vector<8x32xf32> to vector<8x32xbf16>
    %cst_32 = arith.constant dense<0.000000e+00> : vector<8x128xf32>
    %139 = tpu.matmul %138, %2, %cst_32 {dimension_numbers = #tpu.dot_dimension_numbers<[1], [0], [0], [1], [0, 0, 1, 1], [], []>} : vector<8x32xbf16>, vector<32x128xbf16>, vector<8x128xf32> -> vector<8x128xf32>
    %140 = arith.addf %137, %139 : vector<8x128xf32>
    %141 = arith.negf %140 : vector<8x128xf32>
    %142 = math.exp %141 : vector<8x128xf32>
    %cst_33 = arith.constant 1.000000e+00 : f32
    %143 = vector.broadcast %cst_33 : f32 to vector<8x128xf32>
    %144 = arith.addf %143, %142 : vector<8x128xf32>
    %145 = arith.divf %143, %144 : vector<8x128xf32>
    %146 = math.tanh %140 : vector<8x128xf32>
    %147 = vector.extract_strided_slice %145 {offsets = [0, 0], sizes = [8, 32], strides = [1, 1]} : vector<8x128xf32> to vector<8x32xf32>
    %148 = vector.extract_strided_slice %145 {offsets = [0, 32], sizes = [8, 32], strides = [1, 1]} : vector<8x128xf32> to vector<8x32xf32>
    %149 = vector.extract_strided_slice %146 {offsets = [0, 64], sizes = [8, 32], strides = [1, 1]} : vector<8x128xf32> to vector<8x32xf32>
    %150 = vector.extract_strided_slice %145 {offsets = [0, 96], sizes = [8, 32], strides = [1, 1]} : vector<8x128xf32> to vector<8x32xf32>
    %151 = arith.mulf %148, %112 : vector<8x32xf32>
    %152 = arith.mulf %147, %149 : vector<8x32xf32>
    %153 = arith.addf %151, %152 : vector<8x32xf32>
    %154 = math.tanh %153 : vector<8x32xf32>
    %155 = arith.mulf %150, %154 : vector<8x32xf32>
    %156 = arith.truncf %155 : vector<8x32xf32> to vector<8x32xbf16>
    %cst_34 = arith.constant dense<0.000000e+00> : vector<8x128xf32>
    %157 = tpu.matmul %156, %1, %cst_34 {dimension_numbers = #tpu.dot_dimension_numbers<[1], [0], [0], [1], [0, 0, 1, 1], [], []>} : vector<8x32xbf16>, vector<32x128xbf16>, vector<8x128xf32> -> vector<8x128xf32>
    %158 = vector.broadcast %5 : vector<1x128xf32> to vector<8x128xf32>
    %159 = arith.addf %158, %157 : vector<8x128xf32>
    %160 = arith.truncf %136 : vector<8x32xf32> to vector<8x32xbf16>
    %cst_35 = arith.constant dense<0.000000e+00> : vector<8x128xf32>
    %161 = tpu.matmul %160, %3, %cst_35 {dimension_numbers = #tpu.dot_dimension_numbers<[1], [0], [0], [1], [0, 0, 1, 1], [], []>} : vector<8x32xbf16>, vector<32x128xbf16>, vector<8x128xf32> -> vector<8x128xf32>
    %162 = arith.addf %159, %161 : vector<8x128xf32>
    %163 = arith.negf %162 : vector<8x128xf32>
    %164 = math.exp %163 : vector<8x128xf32>
    %cst_36 = arith.constant 1.000000e+00 : f32
    %165 = vector.broadcast %cst_36 : f32 to vector<8x128xf32>
    %166 = arith.addf %165, %164 : vector<8x128xf32>
    %167 = arith.divf %165, %166 : vector<8x128xf32>
    %168 = math.tanh %162 : vector<8x128xf32>
    %169 = vector.extract_strided_slice %167 {offsets = [0, 0], sizes = [8, 32], strides = [1, 1]} : vector<8x128xf32> to vector<8x32xf32>
    %170 = vector.extract_strided_slice %167 {offsets = [0, 32], sizes = [8, 32], strides = [1, 1]} : vector<8x128xf32> to vector<8x32xf32>
    %171 = vector.extract_strided_slice %168 {offsets = [0, 64], sizes = [8, 32], strides = [1, 1]} : vector<8x128xf32> to vector<8x32xf32>
    %172 = vector.extract_strided_slice %167 {offsets = [0, 96], sizes = [8, 32], strides = [1, 1]} : vector<8x128xf32> to vector<8x32xf32>
    %173 = arith.mulf %170, %134 : vector<8x32xf32>
    %174 = arith.mulf %169, %171 : vector<8x32xf32>
    %175 = arith.addf %173, %174 : vector<8x32xf32>
    %176 = math.tanh %175 : vector<8x32xf32>
    %177 = arith.mulf %172, %176 : vector<8x32xf32>
    %178 = vector.extract_strided_slice %9 {offsets = [32, 0], sizes = [8, 128], strides = [1, 1]} : vector<64x128xf32> to vector<8x128xf32>
    %179 = arith.truncf %155 : vector<8x32xf32> to vector<8x32xbf16>
    %cst_37 = arith.constant dense<0.000000e+00> : vector<8x128xf32>
    %180 = tpu.matmul %179, %2, %cst_37 {dimension_numbers = #tpu.dot_dimension_numbers<[1], [0], [0], [1], [0, 0, 1, 1], [], []>} : vector<8x32xbf16>, vector<32x128xbf16>, vector<8x128xf32> -> vector<8x128xf32>
    %181 = arith.addf %178, %180 : vector<8x128xf32>
    %182 = arith.negf %181 : vector<8x128xf32>
    %183 = math.exp %182 : vector<8x128xf32>
    %cst_38 = arith.constant 1.000000e+00 : f32
    %184 = vector.broadcast %cst_38 : f32 to vector<8x128xf32>
    %185 = arith.addf %184, %183 : vector<8x128xf32>
    %186 = arith.divf %184, %185 : vector<8x128xf32>
    %187 = math.tanh %181 : vector<8x128xf32>
    %188 = vector.extract_strided_slice %186 {offsets = [0, 0], sizes = [8, 32], strides = [1, 1]} : vector<8x128xf32> to vector<8x32xf32>
    %189 = vector.extract_strided_slice %186 {offsets = [0, 32], sizes = [8, 32], strides = [1, 1]} : vector<8x128xf32> to vector<8x32xf32>
    %190 = vector.extract_strided_slice %187 {offsets = [0, 64], sizes = [8, 32], strides = [1, 1]} : vector<8x128xf32> to vector<8x32xf32>
    %191 = vector.extract_strided_slice %186 {offsets = [0, 96], sizes = [8, 32], strides = [1, 1]} : vector<8x128xf32> to vector<8x32xf32>
    %192 = arith.mulf %189, %153 : vector<8x32xf32>
    %193 = arith.mulf %188, %190 : vector<8x32xf32>
    %194 = arith.addf %192, %193 : vector<8x32xf32>
    %195 = math.tanh %194 : vector<8x32xf32>
    %196 = arith.mulf %191, %195 : vector<8x32xf32>
    %197 = arith.truncf %196 : vector<8x32xf32> to vector<8x32xbf16>
    %cst_39 = arith.constant dense<0.000000e+00> : vector<8x128xf32>
    %198 = tpu.matmul %197, %1, %cst_39 {dimension_numbers = #tpu.dot_dimension_numbers<[1], [0], [0], [1], [0, 0, 1, 1], [], []>} : vector<8x32xbf16>, vector<32x128xbf16>, vector<8x128xf32> -> vector<8x128xf32>
    %199 = vector.broadcast %5 : vector<1x128xf32> to vector<8x128xf32>
    %200 = arith.addf %199, %198 : vector<8x128xf32>
    %201 = arith.truncf %177 : vector<8x32xf32> to vector<8x32xbf16>
    %cst_40 = arith.constant dense<0.000000e+00> : vector<8x128xf32>
    %202 = tpu.matmul %201, %3, %cst_40 {dimension_numbers = #tpu.dot_dimension_numbers<[1], [0], [0], [1], [0, 0, 1, 1], [], []>} : vector<8x32xbf16>, vector<32x128xbf16>, vector<8x128xf32> -> vector<8x128xf32>
    %203 = arith.addf %200, %202 : vector<8x128xf32>
    %204 = arith.negf %203 : vector<8x128xf32>
    %205 = math.exp %204 : vector<8x128xf32>
    %cst_41 = arith.constant 1.000000e+00 : f32
    %206 = vector.broadcast %cst_41 : f32 to vector<8x128xf32>
    %207 = arith.addf %206, %205 : vector<8x128xf32>
    %208 = arith.divf %206, %207 : vector<8x128xf32>
    %209 = math.tanh %203 : vector<8x128xf32>
    %210 = vector.extract_strided_slice %208 {offsets = [0, 0], sizes = [8, 32], strides = [1, 1]} : vector<8x128xf32> to vector<8x32xf32>
    %211 = vector.extract_strided_slice %208 {offsets = [0, 32], sizes = [8, 32], strides = [1, 1]} : vector<8x128xf32> to vector<8x32xf32>
    %212 = vector.extract_strided_slice %209 {offsets = [0, 64], sizes = [8, 32], strides = [1, 1]} : vector<8x128xf32> to vector<8x32xf32>
    %213 = vector.extract_strided_slice %208 {offsets = [0, 96], sizes = [8, 32], strides = [1, 1]} : vector<8x128xf32> to vector<8x32xf32>
    %214 = arith.mulf %211, %175 : vector<8x32xf32>
    %215 = arith.mulf %210, %212 : vector<8x32xf32>
    %216 = arith.addf %214, %215 : vector<8x32xf32>
    %217 = math.tanh %216 : vector<8x32xf32>
    %218 = arith.mulf %213, %217 : vector<8x32xf32>
    %219 = vector.extract_strided_slice %9 {offsets = [40, 0], sizes = [8, 128], strides = [1, 1]} : vector<64x128xf32> to vector<8x128xf32>
    %220 = arith.truncf %196 : vector<8x32xf32> to vector<8x32xbf16>
    %cst_42 = arith.constant dense<0.000000e+00> : vector<8x128xf32>
    %221 = tpu.matmul %220, %2, %cst_42 {dimension_numbers = #tpu.dot_dimension_numbers<[1], [0], [0], [1], [0, 0, 1, 1], [], []>} : vector<8x32xbf16>, vector<32x128xbf16>, vector<8x128xf32> -> vector<8x128xf32>
    %222 = arith.addf %219, %221 : vector<8x128xf32>
    %223 = arith.negf %222 : vector<8x128xf32>
    %224 = math.exp %223 : vector<8x128xf32>
    %cst_43 = arith.constant 1.000000e+00 : f32
    %225 = vector.broadcast %cst_43 : f32 to vector<8x128xf32>
    %226 = arith.addf %225, %224 : vector<8x128xf32>
    %227 = arith.divf %225, %226 : vector<8x128xf32>
    %228 = math.tanh %222 : vector<8x128xf32>
    %229 = vector.extract_strided_slice %227 {offsets = [0, 0], sizes = [8, 32], strides = [1, 1]} : vector<8x128xf32> to vector<8x32xf32>
    %230 = vector.extract_strided_slice %227 {offsets = [0, 32], sizes = [8, 32], strides = [1, 1]} : vector<8x128xf32> to vector<8x32xf32>
    %231 = vector.extract_strided_slice %228 {offsets = [0, 64], sizes = [8, 32], strides = [1, 1]} : vector<8x128xf32> to vector<8x32xf32>
    %232 = vector.extract_strided_slice %227 {offsets = [0, 96], sizes = [8, 32], strides = [1, 1]} : vector<8x128xf32> to vector<8x32xf32>
    %233 = arith.mulf %230, %194 : vector<8x32xf32>
    %234 = arith.mulf %229, %231 : vector<8x32xf32>
    %235 = arith.addf %233, %234 : vector<8x32xf32>
    %236 = math.tanh %235 : vector<8x32xf32>
    %237 = arith.mulf %232, %236 : vector<8x32xf32>
    %238 = arith.truncf %237 : vector<8x32xf32> to vector<8x32xbf16>
    %cst_44 = arith.constant dense<0.000000e+00> : vector<8x128xf32>
    %239 = tpu.matmul %238, %1, %cst_44 {dimension_numbers = #tpu.dot_dimension_numbers<[1], [0], [0], [1], [0, 0, 1, 1], [], []>} : vector<8x32xbf16>, vector<32x128xbf16>, vector<8x128xf32> -> vector<8x128xf32>
    %240 = vector.broadcast %5 : vector<1x128xf32> to vector<8x128xf32>
    %241 = arith.addf %240, %239 : vector<8x128xf32>
    %242 = arith.truncf %218 : vector<8x32xf32> to vector<8x32xbf16>
    %cst_45 = arith.constant dense<0.000000e+00> : vector<8x128xf32>
    %243 = tpu.matmul %242, %3, %cst_45 {dimension_numbers = #tpu.dot_dimension_numbers<[1], [0], [0], [1], [0, 0, 1, 1], [], []>} : vector<8x32xbf16>, vector<32x128xbf16>, vector<8x128xf32> -> vector<8x128xf32>
    %244 = arith.addf %241, %243 : vector<8x128xf32>
    %245 = arith.negf %244 : vector<8x128xf32>
    %246 = math.exp %245 : vector<8x128xf32>
    %cst_46 = arith.constant 1.000000e+00 : f32
    %247 = vector.broadcast %cst_46 : f32 to vector<8x128xf32>
    %248 = arith.addf %247, %246 : vector<8x128xf32>
    %249 = arith.divf %247, %248 : vector<8x128xf32>
    %250 = math.tanh %244 : vector<8x128xf32>
    %251 = vector.extract_strided_slice %249 {offsets = [0, 0], sizes = [8, 32], strides = [1, 1]} : vector<8x128xf32> to vector<8x32xf32>
    %252 = vector.extract_strided_slice %249 {offsets = [0, 32], sizes = [8, 32], strides = [1, 1]} : vector<8x128xf32> to vector<8x32xf32>
    %253 = vector.extract_strided_slice %250 {offsets = [0, 64], sizes = [8, 32], strides = [1, 1]} : vector<8x128xf32> to vector<8x32xf32>
    %254 = vector.extract_strided_slice %249 {offsets = [0, 96], sizes = [8, 32], strides = [1, 1]} : vector<8x128xf32> to vector<8x32xf32>
    %255 = arith.mulf %252, %216 : vector<8x32xf32>
    %256 = arith.mulf %251, %253 : vector<8x32xf32>
    %257 = arith.addf %255, %256 : vector<8x32xf32>
    %258 = math.tanh %257 : vector<8x32xf32>
    %259 = arith.mulf %254, %258 : vector<8x32xf32>
    %260 = vector.extract_strided_slice %9 {offsets = [48, 0], sizes = [8, 128], strides = [1, 1]} : vector<64x128xf32> to vector<8x128xf32>
    %261 = arith.truncf %237 : vector<8x32xf32> to vector<8x32xbf16>
    %cst_47 = arith.constant dense<0.000000e+00> : vector<8x128xf32>
    %262 = tpu.matmul %261, %2, %cst_47 {dimension_numbers = #tpu.dot_dimension_numbers<[1], [0], [0], [1], [0, 0, 1, 1], [], []>} : vector<8x32xbf16>, vector<32x128xbf16>, vector<8x128xf32> -> vector<8x128xf32>
    %263 = arith.addf %260, %262 : vector<8x128xf32>
    %264 = arith.negf %263 : vector<8x128xf32>
    %265 = math.exp %264 : vector<8x128xf32>
    %cst_48 = arith.constant 1.000000e+00 : f32
    %266 = vector.broadcast %cst_48 : f32 to vector<8x128xf32>
    %267 = arith.addf %266, %265 : vector<8x128xf32>
    %268 = arith.divf %266, %267 : vector<8x128xf32>
    %269 = math.tanh %263 : vector<8x128xf32>
    %270 = vector.extract_strided_slice %268 {offsets = [0, 0], sizes = [8, 32], strides = [1, 1]} : vector<8x128xf32> to vector<8x32xf32>
    %271 = vector.extract_strided_slice %268 {offsets = [0, 32], sizes = [8, 32], strides = [1, 1]} : vector<8x128xf32> to vector<8x32xf32>
    %272 = vector.extract_strided_slice %269 {offsets = [0, 64], sizes = [8, 32], strides = [1, 1]} : vector<8x128xf32> to vector<8x32xf32>
    %273 = vector.extract_strided_slice %268 {offsets = [0, 96], sizes = [8, 32], strides = [1, 1]} : vector<8x128xf32> to vector<8x32xf32>
    %274 = arith.mulf %271, %235 : vector<8x32xf32>
    %275 = arith.mulf %270, %272 : vector<8x32xf32>
    %276 = arith.addf %274, %275 : vector<8x32xf32>
    %277 = math.tanh %276 : vector<8x32xf32>
    %278 = arith.mulf %273, %277 : vector<8x32xf32>
    %279 = arith.truncf %278 : vector<8x32xf32> to vector<8x32xbf16>
    %cst_49 = arith.constant dense<0.000000e+00> : vector<8x128xf32>
    %280 = tpu.matmul %279, %1, %cst_49 {dimension_numbers = #tpu.dot_dimension_numbers<[1], [0], [0], [1], [0, 0, 1, 1], [], []>} : vector<8x32xbf16>, vector<32x128xbf16>, vector<8x128xf32> -> vector<8x128xf32>
    %281 = vector.broadcast %5 : vector<1x128xf32> to vector<8x128xf32>
    %282 = arith.addf %281, %280 : vector<8x128xf32>
    %283 = arith.truncf %259 : vector<8x32xf32> to vector<8x32xbf16>
    %cst_50 = arith.constant dense<0.000000e+00> : vector<8x128xf32>
    %284 = tpu.matmul %283, %3, %cst_50 {dimension_numbers = #tpu.dot_dimension_numbers<[1], [0], [0], [1], [0, 0, 1, 1], [], []>} : vector<8x32xbf16>, vector<32x128xbf16>, vector<8x128xf32> -> vector<8x128xf32>
    %285 = arith.addf %282, %284 : vector<8x128xf32>
    %286 = arith.negf %285 : vector<8x128xf32>
    %287 = math.exp %286 : vector<8x128xf32>
    %cst_51 = arith.constant 1.000000e+00 : f32
    %288 = vector.broadcast %cst_51 : f32 to vector<8x128xf32>
    %289 = arith.addf %288, %287 : vector<8x128xf32>
    %290 = arith.divf %288, %289 : vector<8x128xf32>
    %291 = math.tanh %285 : vector<8x128xf32>
    %292 = vector.extract_strided_slice %290 {offsets = [0, 0], sizes = [8, 32], strides = [1, 1]} : vector<8x128xf32> to vector<8x32xf32>
    %293 = vector.extract_strided_slice %290 {offsets = [0, 32], sizes = [8, 32], strides = [1, 1]} : vector<8x128xf32> to vector<8x32xf32>
    %294 = vector.extract_strided_slice %291 {offsets = [0, 64], sizes = [8, 32], strides = [1, 1]} : vector<8x128xf32> to vector<8x32xf32>
    %295 = vector.extract_strided_slice %290 {offsets = [0, 96], sizes = [8, 32], strides = [1, 1]} : vector<8x128xf32> to vector<8x32xf32>
    %296 = arith.mulf %293, %257 : vector<8x32xf32>
    %297 = arith.mulf %292, %294 : vector<8x32xf32>
    %298 = arith.addf %296, %297 : vector<8x32xf32>
    %299 = math.tanh %298 : vector<8x32xf32>
    %300 = arith.mulf %295, %299 : vector<8x32xf32>
    %301 = vector.extract_strided_slice %9 {offsets = [56, 0], sizes = [8, 128], strides = [1, 1]} : vector<64x128xf32> to vector<8x128xf32>
    %302 = arith.truncf %278 : vector<8x32xf32> to vector<8x32xbf16>
    %cst_52 = arith.constant dense<0.000000e+00> : vector<8x128xf32>
    %303 = tpu.matmul %302, %2, %cst_52 {dimension_numbers = #tpu.dot_dimension_numbers<[1], [0], [0], [1], [0, 0, 1, 1], [], []>} : vector<8x32xbf16>, vector<32x128xbf16>, vector<8x128xf32> -> vector<8x128xf32>
    %304 = arith.addf %301, %303 : vector<8x128xf32>
    %305 = arith.negf %304 : vector<8x128xf32>
    %306 = math.exp %305 : vector<8x128xf32>
    %cst_53 = arith.constant 1.000000e+00 : f32
    %307 = vector.broadcast %cst_53 : f32 to vector<8x128xf32>
    %308 = arith.addf %307, %306 : vector<8x128xf32>
    %309 = arith.divf %307, %308 : vector<8x128xf32>
    %310 = math.tanh %304 : vector<8x128xf32>
    %311 = vector.extract_strided_slice %309 {offsets = [0, 0], sizes = [8, 32], strides = [1, 1]} : vector<8x128xf32> to vector<8x32xf32>
    %312 = vector.extract_strided_slice %309 {offsets = [0, 32], sizes = [8, 32], strides = [1, 1]} : vector<8x128xf32> to vector<8x32xf32>
    %313 = vector.extract_strided_slice %310 {offsets = [0, 64], sizes = [8, 32], strides = [1, 1]} : vector<8x128xf32> to vector<8x32xf32>
    %314 = vector.extract_strided_slice %309 {offsets = [0, 96], sizes = [8, 32], strides = [1, 1]} : vector<8x128xf32> to vector<8x32xf32>
    %315 = arith.mulf %312, %276 : vector<8x32xf32>
    %316 = arith.mulf %311, %313 : vector<8x32xf32>
    %317 = arith.addf %315, %316 : vector<8x32xf32>
    %318 = math.tanh %317 : vector<8x32xf32>
    %319 = arith.mulf %314, %318 : vector<8x32xf32>
    %320 = arith.truncf %319 : vector<8x32xf32> to vector<8x32xbf16>
    %cst_54 = arith.constant dense<0.000000e+00> : vector<8x128xf32>
    %321 = tpu.matmul %320, %1, %cst_54 {dimension_numbers = #tpu.dot_dimension_numbers<[1], [0], [0], [1], [0, 0, 1, 1], [], []>} : vector<8x32xbf16>, vector<32x128xbf16>, vector<8x128xf32> -> vector<8x128xf32>
    %322 = vector.broadcast %5 : vector<1x128xf32> to vector<8x128xf32>
    %323 = arith.addf %322, %321 : vector<8x128xf32>
    %324 = arith.truncf %300 : vector<8x32xf32> to vector<8x32xbf16>
    %cst_55 = arith.constant dense<0.000000e+00> : vector<8x128xf32>
    %325 = tpu.matmul %324, %3, %cst_55 {dimension_numbers = #tpu.dot_dimension_numbers<[1], [0], [0], [1], [0, 0, 1, 1], [], []>} : vector<8x32xbf16>, vector<32x128xbf16>, vector<8x128xf32> -> vector<8x128xf32>
    %326 = arith.addf %323, %325 : vector<8x128xf32>
    %327 = arith.negf %326 : vector<8x128xf32>
    %328 = math.exp %327 : vector<8x128xf32>
    %cst_56 = arith.constant 1.000000e+00 : f32
    %329 = vector.broadcast %cst_56 : f32 to vector<8x128xf32>
    %330 = arith.addf %329, %328 : vector<8x128xf32>
    %331 = arith.divf %329, %330 : vector<8x128xf32>
    %332 = math.tanh %326 : vector<8x128xf32>
    %333 = vector.extract_strided_slice %331 {offsets = [0, 0], sizes = [8, 32], strides = [1, 1]} : vector<8x128xf32> to vector<8x32xf32>
    %334 = vector.extract_strided_slice %331 {offsets = [0, 32], sizes = [8, 32], strides = [1, 1]} : vector<8x128xf32> to vector<8x32xf32>
    %335 = vector.extract_strided_slice %332 {offsets = [0, 64], sizes = [8, 32], strides = [1, 1]} : vector<8x128xf32> to vector<8x32xf32>
    %336 = vector.extract_strided_slice %331 {offsets = [0, 96], sizes = [8, 32], strides = [1, 1]} : vector<8x128xf32> to vector<8x32xf32>
    %337 = arith.mulf %334, %298 : vector<8x32xf32>
    %338 = arith.mulf %333, %335 : vector<8x32xf32>
    %339 = arith.addf %337, %338 : vector<8x32xf32>
    %340 = math.tanh %339 : vector<8x32xf32>
    %341 = arith.mulf %336, %340 : vector<8x32xf32>
    %c0_57 = arith.constant 0 : index
    %c0_58 = arith.constant 0 : index
    %342 = vector.load %arg7[%c0_57, %c0_58] : memref<32x1xf32, #tpu.memory_space<vmem>>, vector<32x1xf32>
    %cst_59 = arith.constant dense<0.000000e+00> : vector<8x1xf32>
    %343 = tpu.matmul %341, %342, %cst_59 {dimension_numbers = #tpu.dot_dimension_numbers<[1], [0], [0], [1], [0, 0, 1, 1], [], []>} : vector<8x32xf32>, vector<32x1xf32>, vector<8x1xf32> -> vector<8x1xf32>
    %c0_60 = arith.constant 0 : index
    %c0_61 = arith.constant 0 : index
    %344 = vector.load %arg8[%c0_60, %c0_61] : memref<1x1xf32, #tpu.memory_space<vmem>>, vector<1x1xf32>
    %345 = vector.broadcast %344 : vector<1x1xf32> to vector<8x1xf32>
    %346 = arith.addf %343, %345 : vector<8x1xf32>
    %c0_62 = arith.constant 0 : index
    %c0_63 = arith.constant 0 : index
    %347 = vector.load %arg9[%c0_62, %c0_63] : memref<8x1xf32, #tpu.memory_space<vmem>>, vector<8x1xf32>
    tpu.vector_store %arg9[%c0_62, %c0_63], %346 {strides = array<i32>} : memref<8x1xf32, #tpu.memory_space<vmem>>, vector<8x1xf32>,
    return
  }
}

</mosaic_0001>

<bundles_post_ra>
// kernel: lstm1_forward.1
= control target key start
LH: loop header
LB: loop body
LE: loop exit
PB: predicated region body
PF: predicated region fallthrough
CT: control target
= control target key end

     0   :  { %vm94_vm0 = vcmask 1041408   ;;  %vm81_vm1 = vcmask 31744   ;;  %v1471_v5 = vmov 0   ;;  %s1472_s17 = smov 64   ;;  %s1473_s18 = smov 32   ;;  %vm139_vm6 = vcmask 261120   ;;  %s1823_s1 = inlined_call_operand.vmem [shape: bf16[4,128], index: 1, kind: input, shape index: {}]   ;;  %s1824_s2 = inlined_call_operand.vmem [shape: bf16[32,128], index: 2, kind: input, shape index: {}]   ;;  %s1825_s0 = inlined_call_operand.vmem [shape: bf16[64,4], index: 0, kind: input, shape index: {}]   ;;  %s1826_s3 = inlined_call_operand.vmem [shape: f32[1,128], index: 3, kind: input, shape index: {}]   ;;  %s1827_s5 = inlined_call_operand.vmem [shape: bf16[32,128], index: 5, kind: input, shape index: {}]   ;;  %s1828_s4 = inlined_call_operand.vmem [shape: bf16[32,128], index: 4, kind: input, shape index: {}]   ;;  %s1829_s6 = inlined_call_operand.vmem [shape: f32[1,128], index: 6, kind: input, shape index: {}]   ;;  %s1830_s7 = inlined_call_operand.vmem [shape: f32[32,1], index: 7, kind: input, shape index: {}]   ;;  %s1831_s8 = inlined_call_operand.<no memory space> [shape: f32[1,1], index: 8, kind: input, shape index: {}]   ;;  %s1832_s9 = inlined_call_operand.vmem [shape: f32[8,1], index: 9, kind: output, shape index: {}]  }
   0x1   :  { %v35_v0 = vld [vmem:[%s1823_s1] sm:$0x3]  ;;  %v1530_v1 = vld [vmem:[%s1824_s2 + $0x8] sm:$0xff] }
   0x2   :  { %v96_v2 = vsel %vm94_vm0, %v35_v0, 0  ;;  %v1331_v3 = vld [vmem:[%s1825_s0] sm:$0xff]  ;;  %149 = vmatpush.bf16.msra.mxu1 %v1530_v1  ;;  %v1564_v32 = vld [vmem:[%s1827_s5 + $0x8] sm:$0xff] }
   0x3   :  { %105 = vmatpush.bf16.msra.mxu0 %v96_v2  ;;  %v1539_v4 = vld [vmem:[%s1824_s2] sm:$0xff]  ;;  %v1569_v33 = vld [vmem:[%s1828_s4 + $0x8] sm:$0xff]  ;;  %248 = vmatpush.bf16.msra.mxu3 %v1564_v32 }
   0x4   :  { %v1552_v6 = vld [vmem:[%s1826_s3] ss:$0 sm:$0xff]  ;;  %219 = vmatpush.bf16.msra.mxu2 %v1569_v33 }
   0x5   :  { %v1575_v34 = vld [vmem:[%s1827_s5] sm:$0xff] }
   0x6   :  { %1258 = vmatmul.msk.bf16.vlgmr.msra.gmra.mxu0 %vm81_vm1, %v1331_v3  ;;  %150 = vmatpush.bf16.msra.mxu1 %v1539_v4  ;;  %v1581_v35 = vld [vmem:[%s1828_s4] sm:$0xff] }
   0x7   :  { %689 = vmatpush.bf16.msrb.mxu0 %v1530_v1  ;;  %249 = vmatpush.bf16.msra.mxu3 %v1575_v34  ;;  %v1604_v46 = vld [vmem:[%s1829_s6] ss:$0 sm:$0xff] }
   0x8   :  { %220 = vmatpush.bf16.msra.mxu2 %v1581_v35 }
   0x9   :  { %151 = vmatmul.bf16.vlgmr.msra.gmra.mxu1 %v1471_v5 }
   0xa   :  { %299 = vmatpush.bf16.msrb.mxu1 %v1530_v1  ;;  %250 = vmatmul.bf16.vlgmr.msra.gmra.mxu3 %v1471_v5 }
   0xb   :  { %690 = vmatpush.bf16.msrb.mxu0 %v1539_v4  ;;  %378 = vmatpush.bf16.msrb.mxu3 %v1564_v32 }
   0xc   :  { %357 = vmatpush.bf16.msrb.mxu2 %v1569_v33 }
   0xe   :  { %300 = vmatpush.bf16.msrb.mxu1 %v1539_v4 }
   0xf   :  { %877 = vmatpush.bf16.msra.mxu0 %v1569_v33  ;;  %379 = vmatpush.bf16.msrb.mxu3 %v1575_v34 }
  0x10   :  { %358 = vmatpush.bf16.msrb.mxu2 %v1581_v35 }
  0x12   :  { %429 = vmatpush.bf16.msra.mxu1 %v1530_v1 }
  0x13   :  { %878 = vmatpush.bf16.msra.mxu0 %v1581_v35  ;;  %508 = vmatpush.bf16.msra.mxu3 %v1564_v32 }
  0x16   :  { %430 = vmatpush.bf16.msra.mxu1 %v1539_v4 }
  0x17   :  { %509 = vmatpush.bf16.msra.mxu3 %v1575_v34 }
  0x83   :  { %v107_v7 = vpop.f32.mrf.mxu0 }
  0x84   :  { %v108_v8 = vadd.f32 %v1552_v6, %v107_v7 }
  0x86   :  { %v152_v9 = vpop.f32.mrf.mxu1 }
  0x87   :  { %v156_v10 = vadd.f32 %v152_v9, %v108_v8 }
  0x89   :  { %1341 = vtanh.f32 %v156_v10  ;;  %v1270_v13 = vmul.f32 -1.442695, %v156_v10 }
  0x8b   :  { %1343 = vpow2.f32 %v1270_v13  ;;  %v109_v42 = vpop.f32.mrf.mxu0 }
  0x8c   :  { %v110_v43 = vadd.f32 %v1552_v6, %v109_v42 }
  0x8d   :  { %v251_v39 = vpop.f32.mrf.mxu3 }
  0x8e   :  { %v154_v11 = vpop.f32.mrf.mxu1 }
  0x8f   :  { %v1342_v12 = vpop.eup %1341 }
  0x90   :  { %179 = vrot.lane.b32.xlu0 %v1342_v12, %s1472_s17 }
  0x91   :  { %v1344_v14 = vpop.eup %1343 }
  0x92   :  { %v160_v15 = vadd.f32 1.0, %v1344_v14 }
  0x94   :  { %1345 = vrcp.f32 %v160_v15  ;;  %v172_v21 = vand.u32 2147483648, %v160_v15  ;;  %vm166_vm3 = vweird.f32 %v160_v15  ;;  %v170_v22 = vand.u32 2147483647, %v160_v15 }
  0x95   :  { %v253_v41 = vpop.f32.mrf.mxu3 }
  0x96   :  { %v173_v24 = vor.u32 1.1754944e-38, %v172_v21  ;;  %vm171_vm5 = vcmp.eq.f32.partialorder %v170_v22, 8.507059e+37 }
  0x9a   :  { %v1346_v16 = vpop.eup %1345 }
  0x9b   :  { %v162_v17 = vmul.f32 %v1346_v16, %v160_v15  ;;  %vm167_vm2 = vweird.f32 %v1346_v16 }
  0x9c   :  { %vm168_vm4 = vmor %vm166_vm3, %vm167_vm2 }
  0x9d   :  { %v163_v18 = vsub.f32 1.0, %v162_v17 }
  0x9f   :  { %v164_v19 = vmul.f32 %v1346_v16, %v163_v18 }
  0xa1   :  { %v165_v20 = vadd.f32 %v1346_v16, %v164_v19 }
  0xa3   :  { %v169_v23 = vsel %vm168_vm4, %v1346_v16, %v165_v20 }
  0xa4   :  { %v174_v26 = vsel %vm171_vm5, %v173_v24, %v169_v23 }
  0xa5   :  { %v177_v28 = vmul.f32 0.0, %v174_v26 }
 0x102   :  { %v180_v25 = vpop.permute.xlu0 %179 }
 0x103   :  { %v182_v27 = vmul.f32 %v180_v25, %v174_v26 }
 0x105   :  { %184 = vrot.lane.b32.xlu0 %v182_v27, %s1473_s18 }
 0x177   :  { %v185_v29 = vpop.permute.xlu0 %184 }
 0x178   :  { %v1557_v30 = vadd.f32 %v185_v29, %v177_v28 }
 0x17a   :  { %1347 = vtanh.f32 %v1557_v30 }
 0x180   :  { %v1348_v31 = vpop.eup %1347 }
 0x181   :  { %190 = vrot.lane.b32.xlu1 %v1348_v31, %s1472_s17 }
 0x1f3   :  { %v191_v36 = vpop.permute.xlu1 %190 }
 0x1f4   :  { %v193_v37 = vmul.f32 %v191_v36, %v174_v26 }
 0x1f6   :  { %v194_v38 = vpack.c.bf16 %v193_v37, %v193_v37 }
 0x1f8   :  { %196 = vrot.lane.b32.xlu1 %v194_v38, %s1473_s18  ;;  %v1332_v38 = vld [vmem:[%s1825_s0 + $0x8] sm:$0xff] }
 0x1f9   :  { %1259 = vmatmul.msk.bf16.gmra.mxu0 %vm81_vm1, %v1332_v38 }
 0x26a   :  { %v197_v40 = vpop.permute.xlu1 %196 }
 0x26b   :  { %1279 = vmatmul.msk.bf16.vlgmr.msra.gmra.mxu2 %vm139_vm6, %v197_v40  ;;  %1289 = vmatmul.msk.bf16.vlgmr.msrb.gmra.mxu1 %vm139_vm6, %v197_v40 }
 0x26c   :  { %487 = vmatpush.bf16.msra.mxu2 %v1569_v33  ;;  %559 = vmatpush.bf16.msrb.mxu1 %v1530_v1 }
 0x270   :  { %488 = vmatpush.bf16.msra.mxu2 %v1581_v35  ;;  %560 = vmatpush.bf16.msrb.mxu1 %v1539_v4 }
 0x2e8   :  { %v302_v44 = vpop.f32.mrf.mxu1 }
 0x2e9   :  { %v306_v45 = vadd.f32 %v302_v44, %v110_v43  ;;  %v112_v44 = vpop.f32.mrf.mxu0 }
 0x2eb   :  { %1349 = vtanh.f32 %v306_v45  ;;  %v1290_v54 = vmul.f32 -1.442695, %v306_v45  ;;  %v113_v45 = vadd.f32 %v1552_v6, %v112_v44 }
 0x2ee   :  { %v222_v47 = vpop.f32.mrf.mxu2 }
 0x2ef   :  { %v229_v48 = vadd.f32 %v1604_v46, %v222_v47 }
 0x2f0   :  { %v304_v49 = vpop.f32.mrf.mxu1 }
 0x2f1   :  { %v1350_v50 = vpop.eup %1349  ;;  %v255_v51 = vadd.f32 %v251_v39, %v229_v48 }
 0x2f2   :  { %329 = vrot.lane.b32.xlu2 %v1350_v50, %s1472_s17 }
 0x2f3   :  { %1351 = vtanh.f32 %v255_v51  ;;  %v1288_v55 = vmul.f32 -1.442695, %v255_v51 }
 0x2f4   :  { %1353 = vpow2.f32 %v1290_v54 }
 0x2f5   :  { %1355 = vpow2.f32 %v1288_v55 }
 0x2f6   :  { %v224_v52 = vpop.f32.mrf.mxu2 }
 0x2f9   :  { %v1352_v53 = vpop.eup %1351 }
 0x2fa   :  { %278 = vrot.lane.b32.xlu2 %v1352_v53, %s1472_s17  ;;  %v1354_v56 = vpop.eup %1353 }
 0x2fb   :  { %v310_v57 = vadd.f32 1.0, %v1354_v56  ;;  %v1356_v58 = vpop.eup %1355 }
 0x2fc   :  { %v259_v59 = vadd.f32 1.0, %v1356_v58 }
 0x2fd   :  { %1357 = vrcp.f32 %v310_v57  ;;  %v322_v7 = vand.u32 2147483648, %v310_v57  ;;  %vm316_vm8 = vweird.f32 %v310_v57  ;;  %v320_v8 = vand.u32 2147483647, %v310_v57 }
 0x2fe   :  { %1359 = vrcp.f32 %v259_v59  ;;  %v271_v16 = vand.u32 2147483648, %v259_v59  ;;  %vm265_vm12 = vweird.f32 %v259_v59  ;;  %v269_v17 = vand.u32 2147483647, %v259_v59 }
 0x2ff   :  { %v323_v11 = vor.u32 1.1754944e-38, %v322_v7  ;;  %vm321_vm10 = vcmp.eq.f32.partialorder %v320_v8, 8.507059e+37 }
 0x300   :  { %v272_v19 = vor.u32 1.1754944e-38, %v271_v16  ;;  %vm270_vm14 = vcmp.eq.f32.partialorder %v269_v17, 8.507059e+37 }
 0x303   :  { %v1358_v60 = vpop.eup %1357 }
 0x304   :  { %v312_v61 = vmul.f32 %v1358_v60, %v310_v57  ;;  %v1360_v63 = vpop.eup %1359  ;;  %vm317_vm7 = vweird.f32 %v1358_v60 }
 0x305   :  { %v261_v2 = vmul.f32 %v1360_v63, %v259_v59  ;;  %vm318_vm9 = vmor %vm316_vm8, %vm317_vm7  ;;  %vm266_vm11 = vweird.f32 %v1360_v63 }
 0x306   :  { %v313_v62 = vsub.f32 1.0, %v312_v61  ;;  %vm267_vm13 = vmor %vm265_vm12, %vm266_vm11 }
 0x307   :  { %v262_v5 = vsub.f32 1.0, %v261_v2 }
 0x308   :  { %v314_v0 = vmul.f32 %v1358_v60, %v313_v62 }
 0x309   :  { %v263_v10 = vmul.f32 %v1360_v63, %v262_v5 }
 0x30a   :  { %v315_v3 = vadd.f32 %v1358_v60, %v314_v0 }
 0x30b   :  { %v264_v15 = vadd.f32 %v1360_v63, %v263_v10 }
 0x30c   :  { %v319_v9 = vsel %vm318_vm9, %v1358_v60, %v315_v3 }
 0x30d   :  { %v324_v13 = vsel %vm321_vm10, %v323_v11, %v319_v9  ;;  %v268_v18 = vsel %vm267_vm13, %v1360_v63, %v264_v15 }
 0x30e   :  { %v273_v21 = vsel %vm270_vm14, %v272_v19, %v268_v18  ;;  %v327_v23 = vmul.f32 %v324_v13, %v1557_v30 }
 0x30f   :  { %v276_v26 = vmul.f32 0.0, %v273_v21 }
 0x34c   :  { %v330_v12 = vpop.permute.xlu2 %329 }
 0x34d   :  { %v332_v14 = vmul.f32 %v330_v12, %v324_v13 }
 0x34f   :  { %334 = vrot.lane.b32.xlu0 %v332_v14, %s1473_s18 }
 0x354   :  { %v279_v20 = vpop.permute.xlu2 %278 }
 0x355   :  { %v281_v22 = vmul.f32 %v279_v20, %v273_v21 }
 0x357   :  { %283 = vrot.lane.b32.xlu1 %v281_v22, %s1473_s18 }
 0x3c1   :  { %v335_v24 = vpop.permute.xlu0 %334 }
 0x3c2   :  { %v1612_v25 = vadd.f32 %v335_v24, %v327_v23 }
 0x3c4   :  { %1361 = vtanh.f32 %v1612_v25 }
 0x3c9   :  { %v284_v27 = vpop.permute.xlu1 %283 }
 0x3ca   :  { %v1362_v28 = vpop.eup %1361  ;;  %v1615_v29 = vadd.f32 %v284_v27, %v276_v26 }
 0x3cb   :  { %340 = vrot.lane.b32.xlu2 %v1362_v28, %s1472_s17 }
 0x3cc   :  { %1363 = vtanh.f32 %v1615_v29 }
 0x3d2   :  { %v1364_v31 = vpop.eup %1363 }
 0x3d3   :  { %289 = vrot.lane.b32.xlu0 %v1364_v31, %s1472_s17 }
 0x425   :  { %v341_v36 = vpop.permute.xlu2 %340 }
 0x426   :  { %v343_v37 = vmul.f32 %v341_v36, %v324_v13 }
 0x428   :  { %v344_v30 = vpack.c.bf16 %v343_v37, %v343_v37 }
 0x42a   :  { %346 = vrot.lane.b32.xlu1 %v344_v30, %s1473_s18 }
 0x445   :  { %v290_v39 = vpop.permute.xlu0 %289 }
 0x446   :  { %v292_v40 = vmul.f32 %v290_v39, %v273_v21 }
 0x448   :  { %v365_v41 = vpack.c.bf16 %v292_v40, %v292_v40 }
 0x44a   :  { %367 = vrot.lane.b32.xlu2 %v365_v41, %s1473_s18 }
 0x49c   :  { %v347_v42 = vpop.permute.xlu1 %346 }
 0x49d   :  { %1291 = vmatmul.msk.bf16.vlgmr.msrb.gmra.mxu2 %vm139_vm6, %v347_v42  ;;  %1294 = vmatmul.msk.bf16.vlgmr.msra.gmra.mxu1 %vm139_vm6, %v347_v42 }
 0x49e   :  { %617 = vmatpush.bf16.msrb.mxu2 %v1569_v33  ;;  %747 = vmatpush.bf16.msra.mxu1 %v1569_v33 }
 0x4a2   :  { %618 = vmatpush.bf16.msrb.mxu2 %v1581_v35  ;;  %748 = vmatpush.bf16.msra.mxu1 %v1581_v35 }
 0x4a4   :  { %v368_v43 = vpop.permute.xlu2 %367 }
 0x4a5   :  { %1292 = vmatmul.msk.bf16.vlgmr.msrb.gmra.mxu3 %vm139_vm6, %v368_v43 }
 0x4a6   :  { %638 = vmatpush.bf16.msrb.mxu3 %v1564_v32 }
 0x4aa   :  { %639 = vmatpush.bf16.msrb.mxu3 %v1575_v34 }
 0x51a   :  { %v432_v47 = vpop.f32.mrf.mxu1 }
 0x51b   :  { %v436_v48 = vadd.f32 %v432_v47, %v113_v45 }
 0x51d   :  { %1365 = vtanh.f32 %v436_v48  ;;  %v1295_v58 = vmul.f32 -1.442695, %v436_v48  ;;  %v114_v48 = vpop.f32.mrf.mxu0 }
 0x520   :  { %v360_v49 = vpop.f32.mrf.mxu2 }
 0x521   :  { %v364_v52 = vadd.f32 %v1604_v46, %v360_v49  ;;  %v115_v49 = vadd.f32 %v1552_v6, %v114_v48 }
 0x522   :  { %v434_v50 = vpop.f32.mrf.mxu1 }
 0x523   :  { %v1366_v51 = vpop.eup %1365 }
 0x524   :  { %459 = vrot.lane.b32.xlu0 %v1366_v51, %s1472_s17 }
 0x528   :  { %v362_v53 = vpop.f32.mrf.mxu2  ;;  %v381_v54 = vpop.f32.mrf.mxu3 }
 0x529   :  { %v385_v55 = vadd.f32 %v381_v54, %v364_v52 }
 0x52b   :  { %1367 = vtanh.f32 %v385_v55  ;;  %v1293_v61 = vmul.f32 -1.442695, %v385_v55 }
 0x52c   :  { %1369 = vpow2.f32 %v1295_v58 }
 0x530   :  { %v383_v56 = vpop.f32.mrf.mxu3 }
 0x531   :  { %v1368_v57 = vpop.eup %1367 }
 0x532   :  { %408 = vrot.lane.b32.xlu1 %v1368_v57, %s1472_s17  ;;  %v1370_v59 = vpop.eup %1369 }
 0x533   :  { %v440_v60 = vadd.f32 1.0, %v1370_v59 }
 0x535   :  { %1371 = vrcp.f32 %v440_v60  ;;  %v452_v9 = vand.u32 2147483648, %v440_v60  ;;  %vm446_vm0 = vweird.f32 %v440_v60  ;;  %v450_v10 = vand.u32 2147483647, %v440_v60 }
 0x536   :  { %1373 = vpow2.f32 %v1293_v61 }
 0x537   :  { %v453_v13 = vor.u32 1.1754944e-38, %v452_v9  ;;  %vm451_vm3 = vcmp.eq.f32.partialorder %v450_v10, 8.507059e+37 }
 0x53b   :  { %v1372_v62 = vpop.eup %1371 }
 0x53c   :  { %v1374_v63 = vpop.eup %1373  ;;  %v442_v0 = vmul.f32 %v1372_v62, %v440_v60  ;;  %vm447_vm15 = vweird.f32 %v1372_v62 }
 0x53d   :  { %v389_v2 = vadd.f32 1.0, %v1374_v63  ;;  %vm448_vm2 = vmor %vm446_vm0, %vm447_vm15 }
 0x53e   :  { %v443_v3 = vsub.f32 1.0, %v442_v0 }
 0x53f   :  { %1375 = vrcp.f32 %v389_v2  ;;  %v401_v20 = vand.u32 2147483648, %v389_v2  ;;  %vm395_vm5 = vweird.f32 %v389_v2  ;;  %v399_v21 = vand.u32 2147483647, %v389_v2 }
 0x540   :  { %v444_v5 = vmul.f32 %v1372_v62, %v443_v3 }
 0x541   :  { %v402_v23 = vor.u32 1.1754944e-38, %v401_v20  ;;  %vm400_vm8 = vcmp.eq.f32.partialorder %v399_v21, 8.507059e+37 }
 0x542   :  { %v445_v8 = vadd.f32 %v1372_v62, %v444_v5 }
 0x544   :  { %v449_v12 = vsel %vm448_vm2, %v1372_v62, %v445_v8 }
 0x545   :  { %v1376_v7 = vpop.eup %1375  ;;  %v454_v15 = vsel %vm451_vm3, %v453_v13, %v449_v12 }
 0x546   :  { %v391_v11 = vmul.f32 %v1376_v7, %v389_v2  ;;  %vm396_vm4 = vweird.f32 %v1376_v7  ;;  %v457_v28 = vmul.f32 %v454_v15, %v1612_v25 }
 0x547   :  { %vm397_vm7 = vmor %vm395_vm5, %vm396_vm4 }
 0x548   :  { %v392_v14 = vsub.f32 1.0, %v391_v11 }
 0x54a   :  { %v393_v18 = vmul.f32 %v1376_v7, %v392_v14 }
 0x54c   :  { %v394_v19 = vadd.f32 %v1376_v7, %v393_v18 }
 0x54e   :  { %v398_v22 = vsel %vm397_vm7, %v1376_v7, %v394_v19 }
 0x54f   :  { %v403_v26 = vsel %vm400_vm8, %v402_v23, %v398_v22 }
 0x550   :  { %v406_v30 = vmul.f32 %v403_v26, %v1615_v29 }
 0x596   :  { %v460_v16 = vpop.permute.xlu0 %459 }
 0x597   :  { %v462_v17 = vmul.f32 %v460_v16, %v454_v15 }
 0x599   :  { %464 = vrot.lane.b32.xlu2 %v462_v17, %s1473_s18 }
 0x5a4   :  { %v409_v24 = vpop.permute.xlu1 %408 }
 0x5a5   :  { %v411_v27 = vmul.f32 %v409_v24, %v403_v26 }
 0x5a7   :  { %413 = vrot.lane.b32.xlu0 %v411_v27, %s1473_s18 }
 0x5f3   :  { %v465_v31 = vpop.permute.xlu2 %464 }
 0x5f4   :  { %v1642_v36 = vadd.f32 %v465_v31, %v457_v28 }
 0x5f6   :  { %1377 = vtanh.f32 %v1642_v36 }
 0x5fc   :  { %v1378_v37 = vpop.eup %1377 }
 0x5fd   :  { %470 = vrot.lane.b32.xlu1 %v1378_v37, %s1472_s17 }
 0x619   :  { %v414_v38 = vpop.permute.xlu0 %413 }
 0x61a   :  { %v1647_v39 = vadd.f32 %v414_v38, %v406_v30 }
 0x61c   :  { %1379 = vtanh.f32 %v1647_v39 }
 0x622   :  { %v1380_v40 = vpop.eup %1379 }
 0x623   :  { %419 = vrot.lane.b32.xlu2 %v1380_v40, %s1472_s17 }
 0x66f   :  { %v471_v41 = vpop.permute.xlu1 %470 }
 0x670   :  { %v473_v25 = vmul.f32 %v471_v41, %v454_v15 }
 0x672   :  { %v474_v42 = vpack.c.bf16 %v473_v25, %v473_v25 }
 0x674   :  { %476 = vrot.lane.b32.xlu0 %v474_v42, %s1473_s18 }
 0x67d   :  { %v420_v43 = vpop.permute.xlu2 %419 }
 0x67e   :  { %v422_v44 = vmul.f32 %v420_v43, %v403_v26 }
 0x680   :  { %v495_v45 = vpack.c.bf16 %v422_v44, %v422_v44 }
 0x682   :  { %497 = vrot.lane.b32.xlu1 %v495_v45, %s1473_s18 }
 0x6e6   :  { %v477_v47 = vpop.permute.xlu0 %476 }
 0x6e7   :  { %1296 = vmatmul.msk.bf16.vlgmr.msra.gmra.mxu2 %vm139_vm6, %v477_v47  ;;  %1299 = vmatmul.msk.bf16.vlgmr.msrb.gmra.mxu1 %vm139_vm6, %v477_v47 }
 0x6e8   :  { %768 = vmatpush.bf16.msra.mxu2 %v1564_v32  ;;  %898 = vmatpush.bf16.msrb.mxu1 %v1564_v32 }
 0x6ec   :  { %769 = vmatpush.bf16.msra.mxu2 %v1575_v34  ;;  %899 = vmatpush.bf16.msrb.mxu1 %v1575_v34 }
 0x6f4   :  { %v498_v29 = vpop.permute.xlu1 %497 }
 0x6f5   :  { %1297 = vmatmul.msk.bf16.vlgmr.msra.gmra.mxu3 %vm139_vm6, %v498_v29 }
 0x6f6   :  { %819 = vmatpush.bf16.msra.mxu3 %v1530_v1 }
 0x6fa   :  { %820 = vmatpush.bf16.msra.mxu3 %v1539_v4 }
 0x764   :  { %v562_v50 = vpop.f32.mrf.mxu1 }
 0x765   :  { %v566_v51 = vadd.f32 %v562_v50, %v115_v49 }
 0x767   :  { %1381 = vtanh.f32 %v566_v51  ;;  %v1300_v61 = vmul.f32 -1.442695, %v566_v51 }
 0x76a   :  { %v490_v52 = vpop.f32.mrf.mxu2 }
 0x76b   :  { %v494_v56 = vadd.f32 %v1604_v46, %v490_v52 }
 0x76c   :  { %v564_v53 = vpop.f32.mrf.mxu1 }
 0x76d   :  { %v1382_v54 = vpop.eup %1381 }
 0x76e   :  { %589 = vrot.lane.b32.xlu2 %v1382_v54, %s1472_s17 }
 0x772   :  { %v492_v55 = vpop.f32.mrf.mxu2 }
 0x778   :  { %v511_v57 = vpop.f32.mrf.mxu3 }
 0x779   :  { %v515_v58 = vadd.f32 %v511_v57, %v494_v56 }
 0x77b   :  { %1383 = vtanh.f32 %v515_v58  ;;  %v1298_v12 = vmul.f32 -1.442695, %v515_v58 }
 0x77c   :  { %1385 = vpow2.f32 %v1300_v61 }
 0x780   :  { %v513_v59 = vpop.f32.mrf.mxu3 }
 0x781   :  { %v1384_v60 = vpop.eup %1383 }
 0x782   :  { %538 = vrot.lane.b32.xlu0 %v1384_v60, %s1472_s17  ;;  %v1386_v62 = vpop.eup %1385 }
 0x783   :  { %v570_v63 = vadd.f32 1.0, %v1386_v62 }
 0x785   :  { %1387 = vrcp.f32 %v570_v63  ;;  %v582_v8 = vand.u32 2147483648, %v570_v63  ;;  %vm576_vm10 = vweird.f32 %v570_v63  ;;  %v580_v9 = vand.u32 2147483647, %v570_v63 }
 0x786   :  { %1389 = vpow2.f32 %v1298_v12 }
 0x787   :  { %v583_v11 = vor.u32 1.1754944e-38, %v582_v8  ;;  %vm581_vm12 = vcmp.eq.f32.partialorder %v580_v9, 8.507059e+37 }
 0x78b   :  { %v1388_v0 = vpop.eup %1387 }
 0x78c   :  { %v572_v2 = vmul.f32 %v1388_v0, %v570_v63  ;;  %vm577_vm9 = vweird.f32 %v1388_v0  ;;  %v1390_v16 = vpop.eup %1389 }
 0x78d   :  { %vm578_vm11 = vmor %vm576_vm10, %vm577_vm9  ;;  %v519_v17 = vadd.f32 1.0, %v1390_v16 }
 0x78e   :  { %v573_v3 = vsub.f32 1.0, %v572_v2 }
 0x78f   :  { %1391 = vrcp.f32 %v519_v17  ;;  %v531_v23 = vand.u32 2147483648, %v519_v17  ;;  %vm525_vm14 = vweird.f32 %v519_v17  ;;  %v529_v24 = vand.u32 2147483647, %v519_v17 }
 0x790   :  { %v574_v5 = vmul.f32 %v1388_v0, %v573_v3 }
 0x791   :  { %v532_v27 = vor.u32 1.1754944e-38, %v531_v23  ;;  %vm530_vm0 = vcmp.eq.f32.partialorder %v529_v24, 8.507059e+37 }
 0x792   :  { %v575_v7 = vadd.f32 %v1388_v0, %v574_v5 }
 0x794   :  { %v579_v10 = vsel %vm578_vm11, %v1388_v0, %v575_v7 }
 0x795   :  { %v584_v13 = vsel %vm581_vm12, %v583_v11, %v579_v10  ;;  %v1392_v18 = vpop.eup %1391 }
 0x796   :  { %v521_v19 = vmul.f32 %v1392_v18, %v519_v17  ;;  %vm526_vm13 = vweird.f32 %v1392_v18  ;;  %v587_v30 = vmul.f32 %v584_v13, %v1642_v36  ;;  %v1333_v36 = vld [vmem:[%s1825_s0 + $0x10] sm:$0xff] }
 0x797   :  { %vm527_vm15 = vmor %vm525_vm14, %vm526_vm13  ;;  %1260 = vmatmul.msk.bf16.gmra.mxu0 %vm81_vm1, %v1333_v36 }
 0x798   :  { %v522_v20 = vsub.f32 1.0, %v521_v19 }
 0x79a   :  { %v523_v21 = vmul.f32 %v1392_v18, %v522_v20 }
 0x79c   :  { %v524_v22 = vadd.f32 %v1392_v18, %v523_v21 }
 0x79e   :  { %v528_v26 = vsel %vm527_vm15, %v1392_v18, %v524_v22 }
 0x79f   :  { %v533_v31 = vsel %vm530_vm0, %v532_v27, %v528_v26 }
 0x7a0   :  { %v536_v25 = vmul.f32 %v533_v31, %v1647_v39  ;;  %v1334_v39 = vld [vmem:[%s1825_s0 + $0x18] sm:$0xff] }
 0x7a7   :  { %1261 = vmatmul.msk.bf16.gmra.mxu0 %vm81_vm1, %v1334_v39 }
 0x7c8   :  { %v590_v14 = vpop.permute.xlu2 %589 }
 0x7c9   :  { %v592_v15 = vmul.f32 %v590_v14, %v584_v13 }
 0x7cb   :  { %594 = vrot.lane.b32.xlu1 %v592_v15, %s1473_s18 }
 0x7f4   :  { %v539_v28 = vpop.permute.xlu0 %538 }
 0x7f5   :  { %v541_v37 = vmul.f32 %v539_v28, %v533_v31 }
 0x7f7   :  { %543 = vrot.lane.b32.xlu2 %v541_v37, %s1473_s18 }
 0x814   :  { %v117_v53 = vpop.f32.mrf.mxu0 }
 0x815   :  { %v118_v57 = vadd.f32 %v1552_v6, %v117_v53 }
 0x81c   :  { %v1697_v54 = vpop.f32.mrf.mxu0 }
 0x824   :  { %v1699_v55 = vpop.f32.mrf.mxu0 }
 0x82c   :  { %v1701_v56 = vpop.f32.mrf.mxu0 }
 0x83d   :  { %v595_v38 = vpop.permute.xlu1 %594 }
 0x83e   :  { %v1669_v40 = vadd.f32 %v595_v38, %v587_v30 }
 0x840   :  { %1393 = vtanh.f32 %v1669_v40 }
 0x846   :  { %v1394_v41 = vpop.eup %1393 }
 0x847   :  { %600 = vrot.lane.b32.xlu0 %v1394_v41, %s1472_s17 }
 0x851   :  { %v544_v42 = vpop.permute.xlu2 %543 }
 0x852   :  { %v1674_v43 = vadd.f32 %v544_v42, %v536_v25 }
 0x854   :  { %1395 = vtanh.f32 %v1674_v43 }
 0x85a   :  { %v1396_v44 = vpop.eup %1395 }
 0x85b   :  { %549 = vrot.lane.b32.xlu1 %v1396_v44, %s1472_s17 }
 0x8b9   :  { %v601_v45 = vpop.permute.xlu0 %600 }
 0x8ba   :  { %v603_v47 = vmul.f32 %v601_v45, %v584_v13 }
 0x8bc   :  { %v604_v29 = vpack.c.bf16 %v603_v47, %v603_v47 }
 0x8be   :  { %606 = vrot.lane.b32.xlu2 %v604_v29, %s1473_s18 }
 0x8cd   :  { %v550_v48 = vpop.permute.xlu1 %549 }
 0x8ce   :  { %v552_v49 = vmul.f32 %v550_v48, %v533_v31 }
 0x8d0   :  { %v625_v50 = vpack.c.bf16 %v552_v49, %v552_v49 }
 0x8d2   :  { %627 = vrot.lane.b32.xlu0 %v625_v50, %s1473_s18 }
 0x918   :  { %v607_v51 = vpop.permute.xlu2 %606 }
 0x919   :  { %1301 = vmatmul.msk.bf16.vlgmr.msrb.gmra.mxu2 %vm139_vm6, %v607_v51  ;;  %1304 = vmatmul.msk.bf16.vlgmr.msrb.gmra.mxu0 %vm139_vm6, %v607_v51 }
 0x91a   :  { %949 = vmatpush.bf16.msrb.mxu2 %v1530_v1  ;;  %1028 = vmatpush.bf16.msrb.mxu0 %v1564_v32 }
 0x91e   :  { %950 = vmatpush.bf16.msrb.mxu2 %v1539_v4  ;;  %1029 = vmatpush.bf16.msrb.mxu0 %v1575_v34 }
 0x944   :  { %v628_v52 = vpop.permute.xlu0 %627 }
 0x945   :  { %1302 = vmatmul.msk.bf16.vlgmr.msrb.gmra.mxu3 %vm139_vm6, %v628_v52 }
 0x946   :  { %1007 = vmatpush.bf16.msrb.mxu3 %v1569_v33 }
 0x94a   :  { %1008 = vmatpush.bf16.msrb.mxu3 %v1581_v35 }
 0x996   :  { %v692_v58 = vpop.f32.mrf.mxu0 }
 0x997   :  { %v696_v59 = vadd.f32 %v692_v58, %v118_v57 }
 0x999   :  { %1397 = vtanh.f32 %v696_v59  ;;  %v1305_v8 = vmul.f32 -1.442695, %v696_v59 }
 0x99c   :  { %v620_v60 = vpop.f32.mrf.mxu2 }
 0x99d   :  { %v624_v0 = vadd.f32 %v1604_v46, %v620_v60 }
 0x99e   :  { %v694_v61 = vpop.f32.mrf.mxu0 }
 0x99f   :  { %v1398_v62 = vpop.eup %1397 }
 0x9a0   :  { %719 = vrot.lane.b32.xlu1 %v1398_v62, %s1472_s17 }
 0x9a4   :  { %v622_v63 = vpop.f32.mrf.mxu2 }
 0x9a5   :  { %v120_v63 = vadd.f32 %v1552_v6, %v1697_v54 }
 0x9c8   :  { %v641_v2 = vpop.f32.mrf.mxu3 }
 0x9c9   :  { %v645_v3 = vadd.f32 %v641_v2, %v624_v0 }
 0x9cb   :  { %1399 = vtanh.f32 %v645_v3  ;;  %v1303_v12 = vmul.f32 -1.442695, %v645_v3 }
 0x9cc   :  { %1401 = vpow2.f32 %v1305_v8 }
 0x9d0   :  { %v643_v5 = vpop.f32.mrf.mxu3 }
 0x9d1   :  { %v1400_v7 = vpop.eup %1399 }
 0x9d2   :  { %668 = vrot.lane.b32.xlu2 %v1400_v7, %s1472_s17  ;;  %v1402_v9 = vpop.eup %1401 }
 0x9d3   :  { %v700_v10 = vadd.f32 1.0, %v1402_v9 }
 0x9d5   :  { %1403 = vrcp.f32 %v700_v10  ;;  %v712_v19 = vand.u32 2147483648, %v700_v10  ;;  %vm706_vm2 = vweird.f32 %v700_v10  ;;  %v710_v20 = vand.u32 2147483647, %v700_v10 }
 0x9d6   :  { %1405 = vpow2.f32 %v1303_v12 }
 0x9d7   :  { %v713_v22 = vor.u32 1.1754944e-38, %v712_v19  ;;  %vm711_vm4 = vcmp.eq.f32.partialorder %v710_v20, 8.507059e+37 }
 0x9db   :  { %v1404_v11 = vpop.eup %1403 }
 0x9dc   :  { %v702_v13 = vmul.f32 %v1404_v11, %v700_v10  ;;  %v1406_v16 = vpop.eup %1405  ;;  %vm707_vm1 = vweird.f32 %v1404_v11 }
 0x9dd   :  { %v649_v18 = vadd.f32 1.0, %v1406_v16  ;;  %vm708_vm3 = vmor %vm706_vm2, %vm707_vm1 }
 0x9de   :  { %v703_v14 = vsub.f32 1.0, %v702_v13 }
 0x9df   :  { %1407 = vrcp.f32 %v649_v18  ;;  %v661_v38 = vand.u32 2147483648, %v649_v18  ;;  %vm655_vm7 = vweird.f32 %v649_v18  ;;  %v659_v41 = vand.u32 2147483647, %v649_v18 }
 0x9e0   :  { %v704_v15 = vmul.f32 %v1404_v11, %v703_v14 }
 0x9e1   :  { %v662_v42 = vor.u32 1.1754944e-38, %v661_v38  ;;  %vm660_vm9 = vcmp.eq.f32.partialorder %v659_v41, 8.507059e+37 }
 0x9e2   :  { %v705_v17 = vadd.f32 %v1404_v11, %v704_v15 }
 0x9e4   :  { %v709_v21 = vsel %vm708_vm3, %v1404_v11, %v705_v17 }
 0x9e5   :  { %v714_v23 = vsel %vm711_vm4, %v713_v22, %v709_v21  ;;  %v1408_v27 = vpop.eup %1407 }
 0x9e6   :  { %v651_v28 = vmul.f32 %v1408_v27, %v649_v18  ;;  %vm656_vm5 = vweird.f32 %v1408_v27  ;;  %v717_v47 = vmul.f32 %v714_v23, %v1669_v40 }
 0x9e7   :  { %vm657_vm8 = vmor %vm655_vm7, %vm656_vm5 }
 0x9e8   :  { %v652_v31 = vsub.f32 1.0, %v651_v28 }
 0x9ea   :  { %v653_v37 = vmul.f32 %v1408_v27, %v652_v31 }
 0x9ec   :  { %v654_v30 = vadd.f32 %v1408_v27, %v653_v37 }
 0x9ee   :  { %v658_v25 = vsel %vm657_vm8, %v1408_v27, %v654_v30 }
 0x9ef   :  { %v663_v36 = vsel %vm660_vm9, %v662_v42, %v658_v25 }
 0x9f0   :  { %v666_v49 = vmul.f32 %v663_v36, %v1674_v43 }
 0xa12   :  { %v720_v24 = vpop.permute.xlu1 %719 }
 0xa13   :  { %v722_v26 = vmul.f32 %v720_v24, %v714_v23 }
 0xa15   :  { %724 = vrot.lane.b32.xlu0 %v722_v26, %s1473_s18 }
 0xa2c   :  { %v669_v44 = vpop.permute.xlu2 %668 }
 0xa2d   :  { %v671_v45 = vmul.f32 %v669_v44, %v663_v36 }
 0xa2f   :  { %673 = vrot.lane.b32.xlu1 %v671_v45, %s1473_s18 }
 0xa87   :  { %v725_v29 = vpop.permute.xlu0 %724 }
 0xa88   :  { %v1710_v39 = vadd.f32 %v725_v29, %v717_v47 }
 0xa8a   :  { %1409 = vtanh.f32 %v1710_v39 }
 0xa90   :  { %v1410_v48 = vpop.eup %1409 }
 0xa91   :  { %730 = vrot.lane.b32.xlu2 %v1410_v48, %s1472_s17 }
 0xaa1   :  { %v674_v50 = vpop.permute.xlu1 %673 }
 0xaa2   :  { %v1715_v51 = vadd.f32 %v674_v50, %v666_v49 }
 0xaa4   :  { %1411 = vtanh.f32 %v1715_v51 }
 0xaaa   :  { %v1412_v52 = vpop.eup %1411 }
 0xaab   :  { %679 = vrot.lane.b32.xlu0 %v1412_v52, %s1472_s17 }
 0xaeb   :  { %v731_v53 = vpop.permute.xlu2 %730 }
 0xaec   :  { %v733_v40 = vmul.f32 %v731_v53, %v714_v23 }
 0xaee   :  { %v734_v57 = vpack.c.bf16 %v733_v40, %v733_v40 }
 0xaf0   :  { %736 = vrot.lane.b32.xlu1 %v734_v57, %s1473_s18 }
 0xb1d   :  { %v680_v58 = vpop.permute.xlu0 %679 }
 0xb1e   :  { %v682_v59 = vmul.f32 %v680_v58, %v663_v36 }
 0xb20   :  { %v755_v60 = vpack.c.bf16 %v682_v59, %v682_v59 }
 0xb22   :  { %757 = vrot.lane.b32.xlu2 %v755_v60, %s1473_s18 }
 0xb62   :  { %v737_v61 = vpop.permute.xlu1 %736 }
 0xb63   :  { %1306 = vmatmul.msk.bf16.vlgmr.msra.gmra.mxu1 %vm139_vm6, %v737_v61  ;;  %1309 = vmatmul.msk.bf16.vlgmr.msra.gmra.mxu3 %vm139_vm6, %v737_v61  ;;  %v1755_v61 = vld [vmem:[%s1826_s3] ss:$0 sm:$0xff] }
 0xb64   :  { %1079 = vmatpush.bf16.msra.mxu1 %v1530_v1  ;;  %1158 = vmatpush.bf16.msra.mxu3 %v1564_v32 }
 0xb68   :  { %1080 = vmatpush.bf16.msra.mxu1 %v1539_v4  ;;  %1159 = vmatpush.bf16.msra.mxu3 %v1575_v34 }
 0xb7c   :  { %v758_v43 = vpop.permute.xlu2 %757 }
 0xb7d   :  { %1307 = vmatmul.msk.bf16.vlgmr.msra.gmra.mxu2 %vm139_vm6, %v758_v43  ;;  %v123_v43 = vadd.f32 %v1755_v61, %v1699_v55 }
 0xb7e   :  { %1137 = vmatpush.bf16.msra.mxu2 %v1569_v33 }
 0xb82   :  { %1138 = vmatpush.bf16.msra.mxu2 %v1581_v35 }
 0xbe0   :  { %v750_v62 = vpop.f32.mrf.mxu1 }
 0xbe1   :  { %v754_v4 = vadd.f32 %v1604_v46, %v750_v62 }
 0xbe6   :  { %v822_v0 = vpop.f32.mrf.mxu3 }
 0xbe7   :  { %v826_v2 = vadd.f32 %v822_v0, %v120_v63 }
 0xbe8   :  { %v752_v1 = vpop.f32.mrf.mxu1 }
 0xbe9   :  { %1413 = vtanh.f32 %v826_v2  ;;  %v1310_v35 = vmul.f32 -1.442695, %v826_v2 }
 0xbee   :  { %v824_v32 = vpop.f32.mrf.mxu3 }
 0xbef   :  { %v1414_v3 = vpop.eup %1413 }
 0xbf0   :  { %849 = vrot.lane.b32.xlu0 %v1414_v3, %s1472_s17 }
 0xc00   :  { %v771_v34 = vpop.f32.mrf.mxu2 }
 0xc01   :  { %v775_v5 = vadd.f32 %v771_v34, %v754_v4 }
 0xc03   :  { %1415 = vtanh.f32 %v775_v5  ;;  %v1308_v9 = vmul.f32 -1.442695, %v775_v5 }
 0xc04   :  { %1417 = vpow2.f32 %v1310_v35 }
 0xc08   :  { %v773_v33 = vpop.f32.mrf.mxu2 }
 0xc09   :  { %v1416_v7 = vpop.eup %1415 }
 0xc0a   :  { %798 = vrot.lane.b32.xlu1 %v1416_v7, %s1472_s17  ;;  %v1418_v6 = vpop.eup %1417 }
 0xc0b   :  { %v830_v54 = vadd.f32 1.0, %v1418_v6 }
 0xc0d   :  { %1419 = vrcp.f32 %v830_v54  ;;  %v842_v16 = vand.u32 2147483648, %v830_v54  ;;  %vm836_vm11 = vweird.f32 %v830_v54  ;;  %v840_v17 = vand.u32 2147483647, %v830_v54 }
 0xc0e   :  { %1421 = vpow2.f32 %v1308_v9 }
 0xc0f   :  { %v843_v19 = vor.u32 1.1754944e-38, %v842_v16  ;;  %vm841_vm13 = vcmp.eq.f32.partialorder %v840_v17, 8.507059e+37 }
 0xc13   :  { %v1420_v8 = vpop.eup %1419 }
 0xc14   :  { %v832_v10 = vmul.f32 %v1420_v8, %v830_v54  ;;  %v1422_v13 = vpop.eup %1421  ;;  %vm837_vm10 = vweird.f32 %v1420_v8 }
 0xc15   :  { %v779_v15 = vadd.f32 1.0, %v1422_v13  ;;  %vm838_vm12 = vmor %vm836_vm11, %vm837_vm10 }
 0xc16   :  { %v833_v11 = vsub.f32 1.0, %v832_v10 }
 0xc17   :  { %1423 = vrcp.f32 %v779_v15  ;;  %v791_v31 = vand.u32 2147483648, %v779_v15  ;;  %vm785_vm15 = vweird.f32 %v779_v15  ;;  %v789_v37 = vand.u32 2147483647, %v779_v15 }
 0xc18   :  { %v834_v12 = vmul.f32 %v1420_v8, %v833_v11 }
 0xc19   :  { %v792_v38 = vor.u32 1.1754944e-38, %v791_v31  ;;  %vm790_vm1 = vcmp.eq.f32.partialorder %v789_v37, 8.507059e+37 }
 0xc1a   :  { %v835_v14 = vadd.f32 %v1420_v8, %v834_v12 }
 0xc1c   :  { %v839_v18 = vsel %vm838_vm12, %v1420_v8, %v835_v14 }
 0xc1d   :  { %v844_v20 = vsel %vm841_vm13, %v843_v19, %v839_v18  ;;  %v1424_v23 = vpop.eup %1423 }
 0xc1e   :  { %v781_v24 = vmul.f32 %v1424_v23, %v779_v15  ;;  %vm786_vm14 = vweird.f32 %v1424_v23  ;;  %v847_v44 = vmul.f32 %v844_v20, %v1710_v39 }
 0xc1f   :  { %vm787_vm0 = vmor %vm785_vm15, %vm786_vm14 }
 0xc20   :  { %v782_v26 = vsub.f32 1.0, %v781_v24 }
 0xc22   :  { %v783_v27 = vmul.f32 %v1424_v23, %v782_v26 }
 0xc24   :  { %v784_v28 = vadd.f32 %v1424_v23, %v783_v27 }
 0xc26   :  { %v788_v30 = vsel %vm787_vm0, %v1424_v23, %v784_v28 }
 0xc27   :  { %v793_v25 = vsel %vm790_vm1, %v792_v38, %v788_v30 }
 0xc28   :  { %v796_v29 = vmul.f32 %v793_v25, %v1715_v51 }
 0xc62   :  { %v850_v21 = vpop.permute.xlu0 %849 }
 0xc63   :  { %v852_v22 = vmul.f32 %v850_v21, %v844_v20 }
 0xc65   :  { %854 = vrot.lane.b32.xlu2 %v852_v22, %s1473_s18 }
 0xc7c   :  { %v799_v41 = vpop.permute.xlu1 %798 }
 0xc7d   :  { %v801_v42 = vmul.f32 %v799_v41, %v793_v25 }
 0xc7f   :  { %803 = vrot.lane.b32.xlu0 %v801_v42, %s1473_s18 }
 0xcbf   :  { %v855_v36 = vpop.permute.xlu2 %854 }
 0xcc0   :  { %v1738_v45 = vadd.f32 %v855_v36, %v847_v44 }
 0xcc2   :  { %1425 = vtanh.f32 %v1738_v45 }
 0xcc8   :  { %v1426_v47 = vpop.eup %1425 }
 0xcc9   :  { %860 = vrot.lane.b32.xlu1 %v1426_v47, %s1472_s17 }
 0xcf1   :  { %v804_v48 = vpop.permute.xlu0 %803 }
 0xcf2   :  { %v1743_v49 = vadd.f32 %v804_v48, %v796_v29 }
 0xcf4   :  { %1427 = vtanh.f32 %v1743_v49 }
 0xcfa   :  { %v1428_v50 = vpop.eup %1427 }
 0xcfb   :  { %809 = vrot.lane.b32.xlu2 %v1428_v50, %s1472_s17 }
 0xd3b   :  { %v861_v52 = vpop.permute.xlu1 %860 }
 0xd3c   :  { %v863_v39 = vmul.f32 %v861_v52, %v844_v20 }
 0xd3e   :  { %v864_v53 = vpack.c.bf16 %v863_v39, %v863_v39 }
 0xd40   :  { %866 = vrot.lane.b32.xlu0 %v864_v53, %s1473_s18 }
 0xd55   :  { %v810_v40 = vpop.permute.xlu2 %809 }
 0xd56   :  { %v812_v57 = vmul.f32 %v810_v40, %v793_v25 }
 0xd58   :  { %v885_v58 = vpack.c.bf16 %v812_v57, %v812_v57  ;;  %v125_v57 = vadd.f32 %v1755_v61, %v1701_v56 }
 0xd5a   :  { %887 = vrot.lane.b32.xlu1 %v885_v58, %s1473_s18 }
 0xdb2   :  { %v867_v59 = vpop.permute.xlu0 %866 }
 0xdb3   :  { %1311 = vmatmul.msk.bf16.vlgmr.msra.gmra.mxu0 %vm139_vm6, %v867_v59  ;;  %1314 = vmatmul.msk.bf16.vlgmr.msrb.gmra.mxu2 %vm139_vm6, %v867_v59 }
 0xdcc   :  { %v888_v51 = vpop.permute.xlu1 %887 }
 0xdcd   :  { %1312 = vmatmul.msk.bf16.vlgmr.msrb.gmra.mxu1 %vm139_vm6, %v888_v51 }
 0xe30   :  { %v880_v60 = vpop.f32.mrf.mxu0 }
 0xe31   :  { %v884_v32 = vadd.f32 %v1604_v46, %v880_v60 }
 0xe36   :  { %v952_v62 = vpop.f32.mrf.mxu2 }
 0xe37   :  { %v956_v63 = vadd.f32 %v952_v62, %v123_v43 }
 0xe38   :  { %v882_v0 = vpop.f32.mrf.mxu0 }
 0xe39   :  { %1429 = vtanh.f32 %v956_v63  ;;  %v1315_v33 = vmul.f32 -1.442695, %v956_v63  ;;  %v1785_v63 = vld [vmem:[%s1829_s6] ss:$0 sm:$0xff] }
 0xe3e   :  { %v954_v2 = vpop.f32.mrf.mxu2 }
 0xe3f   :  { %v1430_v1 = vpop.eup %1429 }
 0xe40   :  { %979 = vrot.lane.b32.xlu2 %v1430_v1, %s1472_s17 }
 0xe4a   :  { %v901_v3 = vpop.f32.mrf.mxu1 }
 0xe4b   :  { %v905_v4 = vadd.f32 %v901_v3, %v884_v32 }
 0xe4d   :  { %1431 = vtanh.f32 %v905_v4  ;;  %v1313_v13 = vmul.f32 -1.442695, %v905_v4 }
 0xe4e   :  { %1433 = vpow2.f32 %v1315_v33 }
 0xe52   :  { %v903_v34 = vpop.f32.mrf.mxu1 }
 0xe53   :  { %v1432_v5 = vpop.eup %1431 }
 0xe54   :  { %928 = vrot.lane.b32.xlu0 %v1432_v5, %s1472_s17  ;;  %v1434_v55 = vpop.eup %1433 }
 0xe55   :  { %v960_v7 = vadd.f32 1.0, %v1434_v55 }
 0xe57   :  { %1435 = vrcp.f32 %v960_v7  ;;  %v972_v10 = vand.u32 2147483648, %v960_v7  ;;  %vm966_vm3 = vweird.f32 %v960_v7  ;;  %v970_v46 = vand.u32 2147483647, %v960_v7 }
 0xe58   :  { %1437 = vpow2.f32 %v1313_v13 }
 0xe59   :  { %v973_v12 = vor.u32 1.1754944e-38, %v972_v10  ;;  %vm971_vm5 = vcmp.eq.f32.partialorder %v970_v46, 8.507059e+37 }
 0xe5d   :  { %v1436_v35 = vpop.eup %1435 }
 0xe5e   :  { %v962_v6 = vmul.f32 %v1436_v35, %v960_v7  ;;  %vm967_vm2 = vweird.f32 %v1436_v35  ;;  %v1438_v17 = vpop.eup %1437 }
 0xe5f   :  { %vm968_vm4 = vmor %vm966_vm3, %vm967_vm2  ;;  %v909_v18 = vadd.f32 1.0, %v1438_v17 }
 0xe60   :  { %v963_v54 = vsub.f32 1.0, %v962_v6 }
 0xe61   :  { %1439 = vrcp.f32 %v909_v18  ;;  %v921_v24 = vand.u32 2147483648, %v909_v18  ;;  %vm915_vm8 = vweird.f32 %v909_v18  ;;  %v919_v26 = vand.u32 2147483647, %v909_v18 }
 0xe62   :  { %v964_v8 = vmul.f32 %v1436_v35, %v963_v54 }
 0xe63   :  { %v922_v28 = vor.u32 1.1754944e-38, %v921_v24  ;;  %vm920_vm10 = vcmp.eq.f32.partialorder %v919_v26, 8.507059e+37 }
 0xe64   :  { %v965_v9 = vadd.f32 %v1436_v35, %v964_v8 }
 0xe66   :  { %v969_v11 = vsel %vm968_vm4, %v1436_v35, %v965_v9 }
 0xe67   :  { %v974_v15 = vsel %vm971_vm5, %v973_v12, %v969_v11  ;;  %v1440_v19 = vpop.eup %1439 }
 0xe68   :  { %v911_v20 = vmul.f32 %v1440_v19, %v909_v18  ;;  %vm916_vm7 = vweird.f32 %v1440_v19  ;;  %v977_v38 = vmul.f32 %v974_v15, %v1738_v45 }
 0xe69   :  { %vm917_vm9 = vmor %vm915_vm8, %vm916_vm7  ;;  %vm1236_vm8 = vcmask 7168  }
 0xe6a   :  { %v912_v21 = vsub.f32 1.0, %v911_v20 }
 0xe6c   :  { %v913_v22 = vmul.f32 %v1440_v19, %v912_v21 }
 0xe6e   :  { %v914_v23 = vadd.f32 %v1440_v19, %v913_v22 }
 0xe70   :  { %v918_v27 = vsel %vm917_vm9, %v1440_v19, %v914_v23 }
 0xe71   :  { %v923_v37 = vsel %vm920_vm10, %v922_v28, %v918_v27 }
 0xe72   :  { %v926_v44 = vmul.f32 %v923_v37, %v1743_v49 }
 0xe9a   :  { %v980_v14 = vpop.permute.xlu2 %979 }
 0xe9b   :  { %v982_v16 = vmul.f32 %v980_v14, %v974_v15 }
 0xe9d   :  { %984 = vrot.lane.b32.xlu1 %v982_v16, %s1473_s18 }
 0xec6   :  { %v929_v31 = vpop.permute.xlu0 %928 }
 0xec7   :  { %v931_v30 = vmul.f32 %v929_v31, %v923_v37 }
 0xec9   :  { %933 = vrot.lane.b32.xlu2 %v931_v30, %s1473_s18 }
 0xf0f   :  { %v985_v41 = vpop.permute.xlu1 %984 }
 0xf10   :  { %v1765_v25 = vadd.f32 %v985_v41, %v977_v38 }
 0xf12   :  { %1441 = vtanh.f32 %v1765_v25 }
 0xf18   :  { %v1442_v42 = vpop.eup %1441 }
 0xf19   :  { %990 = vrot.lane.b32.xlu0 %v1442_v42, %s1472_s17 }
 0xf23   :  { %v934_v36 = vpop.permute.xlu2 %933 }
 0xf24   :  { %v1770_v47 = vadd.f32 %v934_v36, %v926_v44 }
 0xf26   :  { %1443 = vtanh.f32 %v1770_v47 }
 0xf2c   :  { %v1444_v29 = vpop.eup %1443 }
 0xf2d   :  { %939 = vrot.lane.b32.xlu1 %v1444_v29, %s1472_s17 }
 0xf8b   :  { %v991_v48 = vpop.permute.xlu0 %990 }
 0xf8c   :  { %v993_v45 = vmul.f32 %v991_v48, %v974_v15 }
 0xf8e   :  { %v994_v50 = vpack.c.bf16 %v993_v45, %v993_v45 }
 0xf90   :  { %996 = vrot.lane.b32.xlu2 %v994_v50, %s1473_s18 }
 0xf9f   :  { %v940_v52 = vpop.permute.xlu1 %939 }
 0xfa0   :  { %v942_v39 = vmul.f32 %v940_v52, %v923_v37 }
 0xfa2   :  { %v1015_v53 = vpack.c.bf16 %v942_v39, %v942_v39 }
 0xfa4   :  { %1017 = vrot.lane.b32.xlu0 %v1015_v53, %s1473_s18 }
 0xfea   :  { %v997_v40 = vpop.permute.xlu2 %996 }
 0xfeb   :  { %1316 = vmatmul.msk.bf16.vlgmr.msrb.gmra.mxu3 %vm139_vm6, %v997_v40  ;;  %1319 = vmatmul.msk.bf16.vlgmr.msra.gmra.mxu1 %vm139_vm6, %v997_v40 }
0x1016   :  { %v1018_v49 = vpop.permute.xlu0 %1017 }
0x1017   :  { %1317 = vmatmul.msk.bf16.vlgmr.msrb.gmra.mxu0 %vm139_vm6, %v1018_v49 }
0x1068   :  { %v1082_v58 = vpop.f32.mrf.mxu1 }
0x1069   :  { %v1086_v59 = vadd.f32 %v1082_v58, %v125_v57 }
0x106b   :  { %1445 = vtanh.f32 %v1086_v59  ;;  %v1320_v32 = vmul.f32 -1.442695, %v1086_v59 }
0x106e   :  { %v1010_v51 = vpop.f32.mrf.mxu3 }
0x106f   :  { %v1014_v0 = vadd.f32 %v1785_v63, %v1010_v51 }
0x1070   :  { %v1084_v60 = vpop.f32.mrf.mxu1 }
0x1071   :  { %v1446_v43 = vpop.eup %1445 }
0x1072   :  { %1109 = vrot.lane.b32.xlu1 %v1446_v43, %s1472_s17 }
0x1076   :  { %v1012_v62 = vpop.f32.mrf.mxu3 }
0x1094   :  { %v1031_v2 = vpop.f32.mrf.mxu0 }
0x1095   :  { %v1035_v1 = vadd.f32 %v1031_v2, %v1014_v0 }
0x1097   :  { %1447 = vtanh.f32 %v1035_v1  ;;  %v1318_v34 = vmul.f32 -1.442695, %v1035_v1 }
0x1098   :  { %1449 = vpow2.f32 %v1320_v32 }
0x109c   :  { %v1033_v56 = vpop.f32.mrf.mxu0 }
0x109d   :  { %v1448_v61 = vpop.eup %1447 }
0x109e   :  { %1058 = vrot.lane.b32.xlu2 %v1448_v61, %s1472_s17  ;;  %v1450_v3 = vpop.eup %1449 }
0x109f   :  { %v1090_v4 = vadd.f32 1.0, %v1450_v3 }
0x10a1   :  { %1451 = vrcp.f32 %v1090_v4  ;;  %v1102_v8 = vand.u32 2147483648, %v1090_v4  ;;  %vm1096_vm12 = vweird.f32 %v1090_v4  ;;  %v1100_v9 = vand.u32 2147483647, %v1090_v4 }
0x10a2   :  { %1453 = vpow2.f32 %v1318_v34 }
0x10a3   :  { %v1103_v11 = vor.u32 1.1754944e-38, %v1102_v8  ;;  %vm1101_vm14 = vcmp.eq.f32.partialorder %v1100_v9, 8.507059e+37  ;;  %v1203_v8 = vld [vmem:[%s1830_s7] sm:$0xff] }
0x10a7   :  { %v1452_v5 = vpop.eup %1451 }
0x10a8   :  { %v1092_v33 = vmul.f32 %v1452_v5, %v1090_v4  ;;  %v1454_v55 = vpop.eup %1453  ;;  %vm1097_vm11 = vweird.f32 %v1452_v5 }
0x10a9   :  { %v1039_v35 = vadd.f32 1.0, %v1454_v55  ;;  %vm1098_vm13 = vmor %vm1096_vm12, %vm1097_vm11 }
0x10aa   :  { %v1093_v7 = vsub.f32 1.0, %v1092_v33 }
0x10ab   :  { %1455 = vrcp.f32 %v1039_v35  ;;  %v1051_v19 = vand.u32 2147483648, %v1039_v35  ;;  %vm1045_vm0 = vweird.f32 %v1039_v35  ;;  %v1049_v20 = vand.u32 2147483647, %v1039_v35 }
0x10ac   :  { %v1094_v6 = vmul.f32 %v1452_v5, %v1093_v7 }
0x10ad   :  { %v1052_v22 = vor.u32 1.1754944e-38, %v1051_v19  ;;  %vm1050_vm2 = vcmp.eq.f32.partialorder %v1049_v20, 8.507059e+37 }
0x10ae   :  { %v1095_v54 = vadd.f32 %v1452_v5, %v1094_v6  ;;  %v1205_v6 = vld [vmem:[%s1830_s7 + $0x10] sm:$0xff] }
0x10b0   :  { %v1099_v10 = vsel %vm1098_vm13, %v1452_v5, %v1095_v54  ;;  %v1204_v54 = vld [vmem:[%s1830_s7 + $0x8] sm:$0xff] }
0x10b1   :  { %v1456_v46 = vpop.eup %1455  ;;  %v1104_v13 = vsel %vm1101_vm14, %v1103_v11, %v1099_v10 }
0x10b2   :  { %v1041_v15 = vmul.f32 %v1456_v46, %v1039_v35  ;;  %vm1046_vm15 = vweird.f32 %v1456_v46  ;;  %v1107_v27 = vmul.f32 %v1104_v13, %v1765_v25  ;;  %v1206_v35 = vld [vmem:[%s1830_s7 + $0x18] sm:$0xff] }
0x10b3   :  { %vm1047_vm1 = vmor %vm1045_vm0, %vm1046_vm15  ;;  %1228 = vmatpush.msra.mxu0 %v1206_v35 }
0x10b4   :  { %v1042_v16 = vsub.f32 1.0, %v1041_v15 }
0x10b5   :  { %1229 = vmatpush.msra.mxu0 %v1205_v6 }
0x10b6   :  { %v1043_v17 = vmul.f32 %v1456_v46, %v1042_v16 }
0x10b7   :  { %1230 = vmatpush.msra.mxu0 %v1204_v54 }
0x10b8   :  { %v1044_v18 = vadd.f32 %v1456_v46, %v1043_v17 }
0x10b9   :  { %1231 = vmatpush.msra.mxu0 %v1203_v8 }
0x10ba   :  { %v1048_v21 = vsel %vm1047_vm1, %v1456_v46, %v1044_v18  ;;  %v14_v46 = vstv %s1831_s8 }
0x10bb   :  { %v1053_v24 = vsel %vm1050_vm2, %v1052_v22, %v1048_v21  ;;  %15 = vst [vmem:[#allocation2] sm:$0x1] %v14_v46 }
0x10bc   :  { %v1056_v30 = vmul.f32 %v1053_v24, %v1770_v47 }
0x10e4   :  { %v1110_v12 = vpop.permute.xlu1 %1109 }
0x10e5   :  { %v1112_v14 = vmul.f32 %v1110_v12, %v1104_v13  ;;  %v1340_v12 = vld [vmem:[#allocation2] ss:$0 sm:$0xff] }
0x10e7   :  { %1114 = vrot.lane.b32.xlu0 %v1112_v14, %s1473_s18 }
0x10f8   :  { %v1059_v23 = vpop.permute.xlu2 %1058 }
0x10f9   :  { %v1061_v26 = vmul.f32 %v1059_v23, %v1053_v24 }
0x10fb   :  { %1063 = vrot.lane.b32.xlu1 %v1061_v26, %s1473_s18 }
0x1159   :  { %v1115_v28 = vpop.permute.xlu0 %1114 }
0x115a   :  { %v1117_v31 = vadd.f32 %v1115_v28, %v1107_v27 }
0x115c   :  { %1457 = vtanh.f32 %v1117_v31 }
0x1162   :  { %v1458_v37 = vpop.eup %1457 }
0x1163   :  { %1120 = vrot.lane.b32.xlu2 %v1458_v37, %s1472_s17 }
0x116d   :  { %v1064_v38 = vpop.permute.xlu1 %1063 }
0x116e   :  { %v1066_v41 = vadd.f32 %v1064_v38, %v1056_v30 }
0x1170   :  { %1459 = vtanh.f32 %v1066_v41 }
0x1176   :  { %v1460_v42 = vpop.eup %1459 }
0x1177   :  { %1069 = vrot.lane.b32.xlu0 %v1460_v42, %s1472_s17 }
0x11bd   :  { %v1121_v44 = vpop.permute.xlu2 %1120 }
0x11be   :  { %v1123_v36 = vmul.f32 %v1121_v44, %v1104_v13 }
0x11c0   :  { %v1124_v29 = vpack.c.bf16 %v1123_v36, %v1123_v36 }
0x11c2   :  { %1126 = vrot.lane.b32.xlu1 %v1124_v29, %s1473_s18 }
0x11e9   :  { %v1070_v25 = vpop.permute.xlu0 %1069 }
0x11ea   :  { %v1072_v48 = vmul.f32 %v1070_v25, %v1053_v24 }
0x11ec   :  { %v1145_v45 = vpack.c.bf16 %v1072_v48, %v1072_v48 }
0x11ee   :  { %1147 = vrot.lane.b32.xlu2 %v1145_v45, %s1473_s18 }
0x1234   :  { %v1127_v50 = vpop.permute.xlu1 %1126 }
0x1235   :  { %1321 = vmatmul.msk.bf16.vlgmr.msra.gmra.mxu2 %vm139_vm6, %v1127_v50 }
0x1248   :  { %v1148_v47 = vpop.permute.xlu2 %1147 }
0x1249   :  { %1322 = vmatmul.msk.bf16.vlgmr.msra.gmra.mxu3 %vm139_vm6, %v1148_v47 }
0x12b8   :  { %v1140_v52 = vpop.f32.mrf.mxu2 }
0x12b9   :  { %v1144_v53 = vadd.f32 %v1785_v63, %v1140_v52 }
0x12c0   :  { %v1142_v39 = vpop.f32.mrf.mxu2 }
0x12cc   :  { %v1161_v40 = vpop.f32.mrf.mxu3 }
0x12cd   :  { %v1165_v49 = vadd.f32 %v1161_v40, %v1144_v53 }
0x12cf   :  { %1461 = vtanh.f32 %v1165_v49  ;;  %v1323_v59 = vmul.f32 -1.442695, %v1165_v49 }
0x12d1   :  { %1463 = vpow2.f32 %v1323_v59 }
0x12d4   :  { %v1163_v57 = vpop.f32.mrf.mxu3 }
0x12d5   :  { %v1462_v58 = vpop.eup %1461 }
0x12d6   :  { %1188 = vrot.lane.b32.xlu0 %v1462_v58, %s1472_s17 }
0x12d7   :  { %v1464_v51 = vpop.eup %1463 }
0x12d8   :  { %v1169_v60 = vadd.f32 1.0, %v1464_v51 }
0x12da   :  { %1465 = vrcp.f32 %v1169_v60  ;;  %v1181_v56 = vand.u32 2147483648, %v1169_v60  ;;  %vm1175_vm4 = vweird.f32 %v1169_v60  ;;  %v1179_v63 = vand.u32 2147483647, %v1169_v60 }
0x12dc   :  { %v1182_v32 = vor.u32 1.1754944e-38, %v1181_v56  ;;  %vm1180_vm7 = vcmp.eq.f32.partialorder %v1179_v63, 8.507059e+37 }
0x12e0   :  { %v1466_v43 = vpop.eup %1465 }
0x12e1   :  { %v1171_v62 = vmul.f32 %v1466_v43, %v1169_v60  ;;  %vm1176_vm3 = vweird.f32 %v1466_v43 }
0x12e2   :  { %vm1177_vm5 = vmor %vm1175_vm4, %vm1176_vm3 }
0x12e3   :  { %v1172_v0 = vsub.f32 1.0, %v1171_v62 }
0x12e5   :  { %v1173_v2 = vmul.f32 %v1466_v43, %v1172_v0 }
0x12e7   :  { %v1174_v1 = vadd.f32 %v1466_v43, %v1173_v2 }
0x12e9   :  { %v1178_v61 = vsel %vm1177_vm5, %v1466_v43, %v1174_v1 }
0x12ea   :  { %v1183_v4 = vsel %vm1180_vm7, %v1182_v32, %v1178_v61 }
0x12eb   :  { %v1186_v5 = vmul.f32 %v1183_v4, %v1066_v41 }
0x1348   :  { %v1189_v3 = vpop.permute.xlu0 %1188 }
0x1349   :  { %v1191_v34 = vmul.f32 %v1189_v3, %v1183_v4 }
0x134b   :  { %1193 = vrot.lane.b32.xlu1 %v1191_v34, %s1473_s18 }
0x13bd   :  { %v1194_v33 = vpop.permute.xlu1 %1193 }
0x13be   :  { %v1196_v55 = vadd.f32 %v1194_v33, %v1186_v5 }
0x13c0   :  { %1467 = vtanh.f32 %v1196_v55 }
0x13c6   :  { %v1468_v7 = vpop.eup %1467 }
0x13c7   :  { %1199 = vrot.lane.b32.xlu2 %v1468_v7, %s1472_s17 }
0x1421   :  { %v1200_v9 = vpop.permute.xlu2 %1199 }
0x1422   :  { %v1202_v10 = vmul.f32 %v1200_v9, %v1183_v4 }
0x1424   :  { %1212 = vrot.lane.b32.xlu0 %v1202_v10, %s1473_s18 }
0x1496   :  { %v1213_v11 = vpop.permute.xlu0 %1212 }
0x1497   :  { %1324 = vmatmul.msk.f32.vlgmr.msra.gmra.mxu0 %vm139_vm6, %v1213_v11 }
0x1514   :  { %v1233_v13 = vpop.f32.mrf.mxu0 }
0x1515   :  { %v1234_v14 = vadd.f32 %v1340_v12, %v1233_v13 }
0x1517   :  { %1237 = vst.msk [vmem:[%s1832_s9] sm:$0xff] %vm1236_vm8, %v1234_v14 }

</bundles_post_ra>
